<compile_context>
chip_gen: v7x
topology: tpu7x:2x2x1
jax: 0.10.0
libtpu: 0.0.40
codegen_flags: <defaults>
</compile_context>

<pallas_src>
import functools

import jax
import jax.numpy as jnp
from jax.experimental import pallas as pl
from jax.experimental.pallas import tpu as pltpu


NK_PAD = 8  # padded per-variable category width (= one sublane tile)


def _round_up(x, m):
    return ((x + m - 1) // m) * m


# ----------------------------- Pallas kernel ------------------------------ #

def graphspn_kernel(idx_n_ref, idx_e_ref, tbl_n_ref, tbl_e_ref, out_ref,
                    oh_n_ref, oh_e_ref, *, nc, ni_n, ni_e):
    # idx_n_ref: (ND_N, tb) int32  node categorical indices, batch in lanes
    # idx_e_ref: (ND_E, tb) int32  edge categorical indices (padded rows = 127)
    # tbl_n_ref: (nc*ni_n, ND_N*8) f32  padded node leaf log-prob table
    # tbl_e_ref: (nc*ni_e, ND_E*8) f32  padded edge leaf log-prob table
    # out_ref  : (1, tb) f32  per-sample log-likelihood (lane dense)
    # oh_*_ref : VMEM scratch for the in-kernel one-hot tiles
    tb = out_ref.shape[1]
    kio = jax.lax.broadcasted_iota(jnp.int32, (NK_PAD, tb), 0)

    def build_onehot(idx_ref, oh_ref):
        # One (8, tb) one-hot block per (padded) variable.  Padded variables
        # carry an out-of-range index (127) -> all-zero block, so the scratch
        # is fully rewritten every grid step (no stale data, no extra init).
        nd_pad = idx_ref.shape[0]
        for d in range(nd_pad):
            row = idx_ref[pl.ds(d, 1), :]                        # (1, tb)
            oh_ref[pl.ds(NK_PAD * d, NK_PAD), :] = (
                (row == kio).astype(jnp.float32))                # (8, tb)

    build_onehot(idx_n_ref, oh_n_ref)
    build_onehot(idx_e_ref, oh_e_ref)

    def lse_rows(block):
        # logsumexp over the sublane (row) axis -> (1, tb)
        m = jnp.max(block, axis=0, keepdims=True)
        return m + jnp.log(jnp.sum(jnp.exp(block - m), axis=0, keepdims=True))

    def side_lls(tbl_ref, oh_ref, ni):
        # One matmul per side; reduce immediately so only one (nc*ni, tb)
        # f32 value is live at a time.  Row slices are 8-aligned (ni % 8 == 0).
        s = jnp.dot(tbl_ref[...], oh_ref[...],
                    preferred_element_type=jnp.float32)          # (nc*ni, tb)
        return [lse_rows(s[c * ni:(c + 1) * ni, :]) for c in range(nc)]

    lls_n = side_lls(tbl_n_ref, oh_n_ref, ni_n)
    lls_e = side_lls(tbl_e_ref, oh_e_ref, ni_e)
    lls = [a + b for a, b in zip(lls_n, lls_e)]                  # nc x (1, tb)

    # Mixture logsumexp over the nc components (weights folded into tables).
    m = lls[0]
    for ll_c in lls[1:]:
        m = jnp.maximum(m, ll_c)
    acc = jnp.exp(lls[0] - m)
    for ll_c in lls[1:]:
        acc = acc + jnp.exp(ll_c - m)
    out_ref[...] = m + jnp.log(acc)


# ------------------------ parameter preprocessing -------------------------- #

def precompute_tables(params, *, nd_n):
    """Build the padded node/edge leaf log-prob tables (runs once per params)."""
    theta_n = params["theta_n"].astype(jnp.float32)   # (nc, ni_n, nd_n, nk_n)
    theta_e = params["theta_e"].astype(jnp.float32)   # (nc, ni_e, nd_e, nk_e)
    logw_n = params["logw_n"].astype(jnp.float32)     # (nc, ni_n)
    logw_e = params["logw_e"].astype(jnp.float32)     # (nc, ni_e)
    weights = params["weights"].astype(jnp.float32)   # (1, nc)

    nc, ni_n, _, nk_n = theta_n.shape
    _, ni_e, nd_e, nk_e = theta_e.shape
    nd_pad_n = _round_up(nd_n, 16)                    # so ND*8 is a 128-multiple
    nd_pad_e = _round_up(nd_e, 16)

    wmix = jax.nn.log_softmax(weights, axis=1)        # (1, nc)

    # Fold input-distribution log-weights (and the mixture weight, node side
    # only) into the tables: each one-hot column selects exactly nd ones in
    # the un-padded entries, so adding w/nd to every real entry accumulates w.
    lpn = jax.nn.log_softmax(theta_n, axis=-1)
    lpn = lpn + ((logw_n + wmix.reshape(nc, 1)) / nd_n)[:, :, None, None]
    tbl_n = jnp.zeros((nc, ni_n, nd_pad_n, NK_PAD), jnp.float32)
    tbl_n = tbl_n.at[:, :, :nd_n, :nk_n].set(lpn)
    tbl_n = tbl_n.reshape(nc * ni_n, nd_pad_n * NK_PAD)

    lpe = jax.nn.log_softmax(theta_e, axis=-1)
    lpe = lpe + (logw_e / nd_e)[:, :, None, None]
    tbl_e = jnp.zeros((nc, ni_e, nd_pad_e, NK_PAD), jnp.float32)
    tbl_e = tbl_e.at[:, :, :nd_e, :nk_e].set(lpe)
    tbl_e = tbl_e.reshape(nc * ni_e, nd_pad_e * NK_PAD)

    return tbl_n, tbl_e


# ------------------------------ forward ------------------------------------ #

def graphspn_forward(x_oh, a_oh, tbl_n, tbl_e, *, nc, ni_n, ni_e, tb=512):
    """Forward pass of GraphSPNNaiveCatH (regime='cat')."""
    B, nd_n, nk_n = x_oh.shape
    nk_e = a_oh.shape[-1]
    nd_e = nd_n * (nd_n - 1) // 2
    assert nk_n <= NK_PAD and nk_e <= NK_PAD
    # 8-aligned row slices of the matmul result (perf requirement, see review).
    assert ni_n % 8 == 0 and ni_e % 8 == 0, "ni_n/ni_e must be multiples of 8"

    nd_pad_n = _round_up(nd_n, 16)
    nd_pad_e = _round_up(nd_e, 16)
    F_n = nd_pad_n * NK_PAD
    F_e = nd_pad_e * NK_PAD
    assert tbl_n.shape == (nc * ni_n, F_n)
    assert tbl_e.shape == (nc * ni_e, F_e)

    # ---- glue: ohe2cat + strict-lower-triangle edge extraction (tiny) ----
    z = jnp.argmax(x_oh, axis=-1).astype(jnp.int32)          # (B, nd_n)
    a_cat = jnp.argmax(a_oh, axis=-1).astype(jnp.int32)      # (B, nd_n, nd_n)
    ii, jj = jnp.tril_indices(nd_n, k=-1)                    # row-major == a[m]
    l = a_cat[:, ii, jj]                                     # (B, nd_e)

    # Batch tile: clamp to the (128-rounded) batch for small inputs; for large
    # batches use tb (sweep 512-1024; >=2 tiles lets v7x use both TCs).
    tb_eff = max(128, min(tb, _round_up(B, 128)))
    Bp = _round_up(B, tb_eff)

    # Indices with batch in lanes; padded variables/batch columns get 127
    # (out of range 0..7 -> all-zero one-hot rows in the kernel).
    idx_n = jnp.full((nd_pad_n, Bp), 127, jnp.int32).at[:nd_n, :B].set(z.T)
    idx_e = jnp.full((nd_pad_e, Bp), 127, jnp.int32).at[:nd_e, :B].set(l.T)

    kernel = functools.partial(graphspn_kernel, nc=nc, ni_n=ni_n, ni_e=ni_e)

    out = pl.pallas_call(
        kernel,
        out_shape=jax.ShapeDtypeStruct((1, Bp), jnp.float32),
        grid=(Bp // tb_eff,),
        in_specs=[
            pl.BlockSpec((nd_pad_n, tb_eff), lambda i: (0, i)),   # node indices
            pl.BlockSpec((nd_pad_e, tb_eff), lambda i: (0, i)),   # edge indices
            pl.BlockSpec((nc * ni_n, F_n), lambda i: (0, 0)),     # node table
            pl.BlockSpec((nc * ni_e, F_e), lambda i: (0, 0)),     # edge table
        ],
        out_specs=pl.BlockSpec((1, tb_eff), lambda i: (0, i)),    # lane dense
        scratch_shapes=[
            pltpu.VMEM((F_n, tb_eff), jnp.float32),   # node one-hot tile
            pltpu.VMEM((F_e, tb_eff), jnp.float32),   # edge one-hot tile
        ],
        compiler_params=pltpu.CompilerParams(
            dimension_semantics=("parallel",)),
    )(idx_n, idx_e, tbl_n, tbl_e)

    return out[0, :B]


# -------------------------- pure-JAX reference ----------------------------- #

def graphspn_reference(x_oh, a_oh, params):
    theta_n = params["theta_n"]
    theta_e = params["theta_e"]
    logw_n = params["logw_n"]
    logw_e = params["logw_e"]
    weights = params["weights"]
    nc, ni_n, nd_n, nk_n = theta_n.shape
    _, ni_e, nd_e, nk_e = theta_e.shape

    z = jnp.argmax(x_oh, axis=-1)
    a_cat = jnp.argmax(a_oh, axis=-1)
    ii, jj = jnp.tril_indices(nd_n, k=-1)
    l = a_cat[:, ii, jj]

    lpn = jax.nn.log_softmax(theta_n, axis=-1)   # (nc, ni_n, nd_n, nk_n)
    lpe = jax.nn.log_softmax(theta_e, axis=-1)

    def comp_ll(lp, logw, idx):
        # lp: (nc, ni, nd, nk), idx: (B, nd) -> (B, nc)
        sel = jnp.take_along_axis(
            lp[None], idx[:, None, None, :, None], axis=-1)[..., 0]  # (B,nc,ni,nd)
        s = sel.sum(axis=-1) + logw[None]                            # (B,nc,ni)
        return jax.scipy.special.logsumexp(s, axis=-1)               # (B,nc)

    ll_nodes = comp_ll(lpn, logw_n, z)
    ll_edges = comp_ll(lpe, logw_e, l)
    wmix = jax.nn.log_softmax(weights, axis=1)
    return jax.scipy.special.logsumexp(ll_nodes + ll_edges + wmix, axis=1)


# --------------------------------- main ------------------------------------ #

if __name__ == "__main__":
    # Module hyper-parameters (small, consistent with GraphSPNNaiveCatH)
    nc, nd_n, nk_n, nk_e = 4, 9, 5, 4
    ni_n, ni_e = 8, 8
    nd_e = nd_n * (nd_n - 1) // 2        # 36
    B = 16

    key = jax.random.PRNGKey(0)
    k1, k2, k3, k4, k5, k6, k7 = jax.random.split(key, 7)

    params = {
        "theta_n": jax.random.normal(k1, (nc, ni_n, nd_n, nk_n), jnp.float32),
        "theta_e": jax.random.normal(k2, (nc, ni_e, nd_e, nk_e), jnp.float32),
        "logw_n": jax.nn.log_softmax(
            jax.random.normal(k3, (nc, ni_n), jnp.float32), axis=-1),
        "logw_e": jax.nn.log_softmax(
            jax.random.normal(k4, (nc, ni_e), jnp.float32), axis=-1),
        "weights": jax.nn.log_softmax(
            jax.random.normal(k5, (1, nc), jnp.float32), axis=1),
    }

    # One-hot inputs (as the PyTorch forward expects before ohe2cat)
    z_idx = jax.random.randint(k6, (B, nd_n), 0, nk_n)
    a_idx = jax.random.randint(k7, (B, nd_n, nd_n), 0, nk_e)
    x_oh = jax.nn.one_hot(z_idx, nk_n, dtype=jnp.float32)       # (B, nd_n, nk_n)
    a_oh = jax.nn.one_hot(a_idx, nk_e, dtype=jnp.float32)       # (B, nd_n, nd_n, nk_e)

    # Parameter preprocessing is hoisted out of the forward path (cache it
    # across calls when params are static).
    tbl_n, tbl_e = precompute_tables(params, nd_n=nd_n)
    tbl_n = jax.block_until_ready(tbl_n)
    tbl_e = jax.block_until_ready(tbl_e)

    out = graphspn_forward(x_oh, a_oh, tbl_n, tbl_e,
                           nc=nc, ni_n=ni_n, ni_e=ni_e)
    out = jax.block_until_ready(out)

    ref = graphspn_reference(x_oh, a_oh, params)
    assert out.shape == (B,)
    assert jnp.allclose(out, ref, rtol=1e-4, atol=1e-4), (out, ref)

    print("KERNEL_OK")
</pallas_src>

<mosaic_0001>
module attributes {stable_mosaic.version = 11 : i64} {
  func.func @graphspn_kernel(%arg0: i32, %arg1: memref<16x128xi32, #tpu.memory_space<vmem>>, %arg2: memref<48x128xi32, #tpu.memory_space<vmem>>, %arg3: memref<32x128xf32, #tpu.memory_space<vmem>>, %arg4: memref<32x384xf32, #tpu.memory_space<vmem>>, %arg5: memref<1x128xf32, #tpu.memory_space<vmem>>, %arg6: memref<128x128xf32, #tpu.memory_space<vmem>>, %arg7: memref<384x128xf32, #tpu.memory_space<vmem>>) attributes {dimension_semantics = [#tpu.dimension_semantics<parallel>], iteration_bounds = array<i64: 1>, scalar_prefetch = 0 : i64, scratch_operands = 2 : i64, tpu.core_type = #tpu.core_type<tc>, window_params = [{transform_indices = @transform_0, window_bounds = array<i64: 16, 128>}, {transform_indices = @transform_1, window_bounds = array<i64: 48, 128>}, {pipeline_mode = #tpu.pipeline_mode<synchronous>, transform_indices = @transform_2, window_bounds = array<i64: 32, 128>}, {pipeline_mode = #tpu.pipeline_mode<synchronous>, transform_indices = @transform_3, window_bounds = array<i64: 32, 384>}, {transform_indices = @transform_4, window_bounds = array<i64: 1, 128>}]} {
    %0 = tpu.iota {dimensions = array<i32: 0>} : vector<8x128xi32>
    %c0 = arith.constant 0 : index
    %c0_0 = arith.constant 0 : index
    %1 = vector.load %arg1[%c0, %c0_0] : memref<16x128xi32, #tpu.memory_space<vmem>>, vector<1x128xi32>
    %2 = vector.broadcast %1 : vector<1x128xi32> to vector<8x128xi32>
    %3 = arith.cmpi eq, %2, %0 : vector<8x128xi32>
    %4 = arith.extui %3 : vector<8x128xi1> to vector<8x128xi32>
    %5 = arith.sitofp %4 : vector<8x128xi32> to vector<8x128xf32>
    %c0_1 = arith.constant 0 : index
    %c0_2 = arith.constant 0 : index
    %6 = vector.load %arg6[%c0_1, %c0_2] : memref<128x128xf32, #tpu.memory_space<vmem>>, vector<8x128xf32>
    tpu.vector_store %arg6[%c0_1, %c0_2], %5 {strides = array<i32>} : memref<128x128xf32, #tpu.memory_space<vmem>>, vector<8x128xf32>,
    %c1 = arith.constant 1 : index
    %c0_3 = arith.constant 0 : index
    %7 = vector.load %arg1[%c1, %c0_3] : memref<16x128xi32, #tpu.memory_space<vmem>>, vector<1x128xi32>
    %8 = vector.broadcast %7 : vector<1x128xi32> to vector<8x128xi32>
    %9 = arith.cmpi eq, %8, %0 : vector<8x128xi32>
    %10 = arith.extui %9 : vector<8x128xi1> to vector<8x128xi32>
    %11 = arith.sitofp %10 : vector<8x128xi32> to vector<8x128xf32>
    %c8 = arith.constant 8 : index
    %c0_4 = arith.constant 0 : index
    %12 = vector.load %arg6[%c8, %c0_4] : memref<128x128xf32, #tpu.memory_space<vmem>>, vector<8x128xf32>
    tpu.vector_store %arg6[%c8, %c0_4], %11 {strides = array<i32>} : memref<128x128xf32, #tpu.memory_space<vmem>>, vector<8x128xf32>,
    %c2 = arith.constant 2 : index
    %c0_5 = arith.constant 0 : index
    %13 = vector.load %arg1[%c2, %c0_5] : memref<16x128xi32, #tpu.memory_space<vmem>>, vector<1x128xi32>
    %14 = vector.broadcast %13 : vector<1x128xi32> to vector<8x128xi32>
    %15 = arith.cmpi eq, %14, %0 : vector<8x128xi32>
    %16 = arith.extui %15 : vector<8x128xi1> to vector<8x128xi32>
    %17 = arith.sitofp %16 : vector<8x128xi32> to vector<8x128xf32>
    %c16 = arith.constant 16 : index
    %c0_6 = arith.constant 0 : index
    %18 = vector.load %arg6[%c16, %c0_6] : memref<128x128xf32, #tpu.memory_space<vmem>>, vector<8x128xf32>
    tpu.vector_store %arg6[%c16, %c0_6], %17 {strides = array<i32>} : memref<128x128xf32, #tpu.memory_space<vmem>>, vector<8x128xf32>,
    %c3 = arith.constant 3 : index
    %c0_7 = arith.constant 0 : index
    %19 = vector.load %arg1[%c3, %c0_7] : memref<16x128xi32, #tpu.memory_space<vmem>>, vector<1x128xi32>
    %20 = vector.broadcast %19 : vector<1x128xi32> to vector<8x128xi32>
    %21 = arith.cmpi eq, %20, %0 : vector<8x128xi32>
    %22 = arith.extui %21 : vector<8x128xi1> to vector<8x128xi32>
    %23 = arith.sitofp %22 : vector<8x128xi32> to vector<8x128xf32>
    %c24 = arith.constant 24 : index
    %c0_8 = arith.constant 0 : index
    %24 = vector.load %arg6[%c24, %c0_8] : memref<128x128xf32, #tpu.memory_space<vmem>>, vector<8x128xf32>
    tpu.vector_store %arg6[%c24, %c0_8], %23 {strides = array<i32>} : memref<128x128xf32, #tpu.memory_space<vmem>>, vector<8x128xf32>,
    %c4 = arith.constant 4 : index
    %c0_9 = arith.constant 0 : index
    %25 = vector.load %arg1[%c4, %c0_9] : memref<16x128xi32, #tpu.memory_space<vmem>>, vector<1x128xi32>
    %26 = vector.broadcast %25 : vector<1x128xi32> to vector<8x128xi32>
    %27 = arith.cmpi eq, %26, %0 : vector<8x128xi32>
    %28 = arith.extui %27 : vector<8x128xi1> to vector<8x128xi32>
    %29 = arith.sitofp %28 : vector<8x128xi32> to vector<8x128xf32>
    %c32 = arith.constant 32 : index
    %c0_10 = arith.constant 0 : index
    %30 = vector.load %arg6[%c32, %c0_10] : memref<128x128xf32, #tpu.memory_space<vmem>>, vector<8x128xf32>
    tpu.vector_store %arg6[%c32, %c0_10], %29 {strides = array<i32>} : memref<128x128xf32, #tpu.memory_space<vmem>>, vector<8x128xf32>,
    %c5 = arith.constant 5 : index
    %c0_11 = arith.constant 0 : index
    %31 = vector.load %arg1[%c5, %c0_11] : memref<16x128xi32, #tpu.memory_space<vmem>>, vector<1x128xi32>
    %32 = vector.broadcast %31 : vector<1x128xi32> to vector<8x128xi32>
    %33 = arith.cmpi eq, %32, %0 : vector<8x128xi32>
    %34 = arith.extui %33 : vector<8x128xi1> to vector<8x128xi32>
    %35 = arith.sitofp %34 : vector<8x128xi32> to vector<8x128xf32>
    %c40 = arith.constant 40 : index
    %c0_12 = arith.constant 0 : index
    %36 = vector.load %arg6[%c40, %c0_12] : memref<128x128xf32, #tpu.memory_space<vmem>>, vector<8x128xf32>
    tpu.vector_store %arg6[%c40, %c0_12], %35 {strides = array<i32>} : memref<128x128xf32, #tpu.memory_space<vmem>>, vector<8x128xf32>,
    %c6 = arith.constant 6 : index
    %c0_13 = arith.constant 0 : index
    %37 = vector.load %arg1[%c6, %c0_13] : memref<16x128xi32, #tpu.memory_space<vmem>>, vector<1x128xi32>
    %38 = vector.broadcast %37 : vector<1x128xi32> to vector<8x128xi32>
    %39 = arith.cmpi eq, %38, %0 : vector<8x128xi32>
    %40 = arith.extui %39 : vector<8x128xi1> to vector<8x128xi32>
    %41 = arith.sitofp %40 : vector<8x128xi32> to vector<8x128xf32>
    %c48 = arith.constant 48 : index
    %c0_14 = arith.constant 0 : index
    %42 = vector.load %arg6[%c48, %c0_14] : memref<128x128xf32, #tpu.memory_space<vmem>>, vector<8x128xf32>
    tpu.vector_store %arg6[%c48, %c0_14], %41 {strides = array<i32>} : memref<128x128xf32, #tpu.memory_space<vmem>>, vector<8x128xf32>,
    %c7 = arith.constant 7 : index
    %c0_15 = arith.constant 0 : index
    %43 = vector.load %arg1[%c7, %c0_15] : memref<16x128xi32, #tpu.memory_space<vmem>>, vector<1x128xi32>
    %44 = vector.broadcast %43 : vector<1x128xi32> to vector<8x128xi32>
    %45 = arith.cmpi eq, %44, %0 : vector<8x128xi32>
    %46 = arith.extui %45 : vector<8x128xi1> to vector<8x128xi32>
    %47 = arith.sitofp %46 : vector<8x128xi32> to vector<8x128xf32>
    %c56 = arith.constant 56 : index
    %c0_16 = arith.constant 0 : index
    %48 = vector.load %arg6[%c56, %c0_16] : memref<128x128xf32, #tpu.memory_space<vmem>>, vector<8x128xf32>
    tpu.vector_store %arg6[%c56, %c0_16], %47 {strides = array<i32>} : memref<128x128xf32, #tpu.memory_space<vmem>>, vector<8x128xf32>,
    %c8_17 = arith.constant 8 : index
    %c0_18 = arith.constant 0 : index
    %49 = vector.load %arg1[%c8_17, %c0_18] : memref<16x128xi32, #tpu.memory_space<vmem>>, vector<1x128xi32>
    %50 = vector.broadcast %49 : vector<1x128xi32> to vector<8x128xi32>
    %51 = arith.cmpi eq, %50, %0 : vector<8x128xi32>
    %52 = arith.extui %51 : vector<8x128xi1> to vector<8x128xi32>
    %53 = arith.sitofp %52 : vector<8x128xi32> to vector<8x128xf32>
    %c64 = arith.constant 64 : index
    %c0_19 = arith.constant 0 : index
    %54 = vector.load %arg6[%c64, %c0_19] : memref<128x128xf32, #tpu.memory_space<vmem>>, vector<8x128xf32>
    tpu.vector_store %arg6[%c64, %c0_19], %53 {strides = array<i32>} : memref<128x128xf32, #tpu.memory_space<vmem>>, vector<8x128xf32>,
    %c9 = arith.constant 9 : index
    %c0_20 = arith.constant 0 : index
    %55 = vector.load %arg1[%c9, %c0_20] : memref<16x128xi32, #tpu.memory_space<vmem>>, vector<1x128xi32>
    %56 = vector.broadcast %55 : vector<1x128xi32> to vector<8x128xi32>
    %57 = arith.cmpi eq, %56, %0 : vector<8x128xi32>
    %58 = arith.extui %57 : vector<8x128xi1> to vector<8x128xi32>
    %59 = arith.sitofp %58 : vector<8x128xi32> to vector<8x128xf32>
    %c72 = arith.constant 72 : index
    %c0_21 = arith.constant 0 : index
    %60 = vector.load %arg6[%c72, %c0_21] : memref<128x128xf32, #tpu.memory_space<vmem>>, vector<8x128xf32>
    tpu.vector_store %arg6[%c72, %c0_21], %59 {strides = array<i32>} : memref<128x128xf32, #tpu.memory_space<vmem>>, vector<8x128xf32>,
    %c10 = arith.constant 10 : index
    %c0_22 = arith.constant 0 : index
    %61 = vector.load %arg1[%c10, %c0_22] : memref<16x128xi32, #tpu.memory_space<vmem>>, vector<1x128xi32>
    %62 = vector.broadcast %61 : vector<1x128xi32> to vector<8x128xi32>
    %63 = arith.cmpi eq, %62, %0 : vector<8x128xi32>
    %64 = arith.extui %63 : vector<8x128xi1> to vector<8x128xi32>
    %65 = arith.sitofp %64 : vector<8x128xi32> to vector<8x128xf32>
    %c80 = arith.constant 80 : index
    %c0_23 = arith.constant 0 : index
    %66 = vector.load %arg6[%c80, %c0_23] : memref<128x128xf32, #tpu.memory_space<vmem>>, vector<8x128xf32>
    tpu.vector_store %arg6[%c80, %c0_23], %65 {strides = array<i32>} : memref<128x128xf32, #tpu.memory_space<vmem>>, vector<8x128xf32>,
    %c11 = arith.constant 11 : index
    %c0_24 = arith.constant 0 : index
    %67 = vector.load %arg1[%c11, %c0_24] : memref<16x128xi32, #tpu.memory_space<vmem>>, vector<1x128xi32>
    %68 = vector.broadcast %67 : vector<1x128xi32> to vector<8x128xi32>
    %69 = arith.cmpi eq, %68, %0 : vector<8x128xi32>
    %70 = arith.extui %69 : vector<8x128xi1> to vector<8x128xi32>
    %71 = arith.sitofp %70 : vector<8x128xi32> to vector<8x128xf32>
    %c88 = arith.constant 88 : index
    %c0_25 = arith.constant 0 : index
    %72 = vector.load %arg6[%c88, %c0_25] : memref<128x128xf32, #tpu.memory_space<vmem>>, vector<8x128xf32>
    tpu.vector_store %arg6[%c88, %c0_25], %71 {strides = array<i32>} : memref<128x128xf32, #tpu.memory_space<vmem>>, vector<8x128xf32>,
    %c12 = arith.constant 12 : index
    %c0_26 = arith.constant 0 : index
    %73 = vector.load %arg1[%c12, %c0_26] : memref<16x128xi32, #tpu.memory_space<vmem>>, vector<1x128xi32>
    %74 = vector.broadcast %73 : vector<1x128xi32> to vector<8x128xi32>
    %75 = arith.cmpi eq, %74, %0 : vector<8x128xi32>
    %76 = arith.extui %75 : vector<8x128xi1> to vector<8x128xi32>
    %77 = arith.sitofp %76 : vector<8x128xi32> to vector<8x128xf32>
    %c96 = arith.constant 96 : index
    %c0_27 = arith.constant 0 : index
    %78 = vector.load %arg6[%c96, %c0_27] : memref<128x128xf32, #tpu.memory_space<vmem>>, vector<8x128xf32>
    tpu.vector_store %arg6[%c96, %c0_27], %77 {strides = array<i32>} : memref<128x128xf32, #tpu.memory_space<vmem>>, vector<8x128xf32>,
    %c13 = arith.constant 13 : index
    %c0_28 = arith.constant 0 : index
    %79 = vector.load %arg1[%c13, %c0_28] : memref<16x128xi32, #tpu.memory_space<vmem>>, vector<1x128xi32>
    %80 = vector.broadcast %79 : vector<1x128xi32> to vector<8x128xi32>
    %81 = arith.cmpi eq, %80, %0 : vector<8x128xi32>
    %82 = arith.extui %81 : vector<8x128xi1> to vector<8x128xi32>
    %83 = arith.sitofp %82 : vector<8x128xi32> to vector<8x128xf32>
    %c104 = arith.constant 104 : index
    %c0_29 = arith.constant 0 : index
    %84 = vector.load %arg6[%c104, %c0_29] : memref<128x128xf32, #tpu.memory_space<vmem>>, vector<8x128xf32>
    tpu.vector_store %arg6[%c104, %c0_29], %83 {strides = array<i32>} : memref<128x128xf32, #tpu.memory_space<vmem>>, vector<8x128xf32>,
    %c14 = arith.constant 14 : index
    %c0_30 = arith.constant 0 : index
    %85 = vector.load %arg1[%c14, %c0_30] : memref<16x128xi32, #tpu.memory_space<vmem>>, vector<1x128xi32>
    %86 = vector.broadcast %85 : vector<1x128xi32> to vector<8x128xi32>
    %87 = arith.cmpi eq, %86, %0 : vector<8x128xi32>
    %88 = arith.extui %87 : vector<8x128xi1> to vector<8x128xi32>
    %89 = arith.sitofp %88 : vector<8x128xi32> to vector<8x128xf32>
    %c112 = arith.constant 112 : index
    %c0_31 = arith.constant 0 : index
    %90 = vector.load %arg6[%c112, %c0_31] : memref<128x128xf32, #tpu.memory_space<vmem>>, vector<8x128xf32>
    tpu.vector_store %arg6[%c112, %c0_31], %89 {strides = array<i32>} : memref<128x128xf32, #tpu.memory_space<vmem>>, vector<8x128xf32>,
    %c15 = arith.constant 15 : index
    %c0_32 = arith.constant 0 : index
    %91 = vector.load %arg1[%c15, %c0_32] : memref<16x128xi32, #tpu.memory_space<vmem>>, vector<1x128xi32>
    %92 = vector.broadcast %91 : vector<1x128xi32> to vector<8x128xi32>
    %93 = arith.cmpi eq, %92, %0 : vector<8x128xi32>
    %94 = arith.extui %93 : vector<8x128xi1> to vector<8x128xi32>
    %95 = arith.sitofp %94 : vector<8x128xi32> to vector<8x128xf32>
    %c120 = arith.constant 120 : index
    %c0_33 = arith.constant 0 : index
    %96 = vector.load %arg6[%c120, %c0_33] : memref<128x128xf32, #tpu.memory_space<vmem>>, vector<8x128xf32>
    tpu.vector_store %arg6[%c120, %c0_33], %95 {strides = array<i32>} : memref<128x128xf32, #tpu.memory_space<vmem>>, vector<8x128xf32>,
    %c0_34 = arith.constant 0 : index
    %c0_35 = arith.constant 0 : index
    %97 = vector.load %arg2[%c0_34, %c0_35] : memref<48x128xi32, #tpu.memory_space<vmem>>, vector<1x128xi32>
    %98 = vector.broadcast %97 : vector<1x128xi32> to vector<8x128xi32>
    %99 = arith.cmpi eq, %98, %0 : vector<8x128xi32>
    %100 = arith.extui %99 : vector<8x128xi1> to vector<8x128xi32>
    %101 = arith.sitofp %100 : vector<8x128xi32> to vector<8x128xf32>
    %c0_36 = arith.constant 0 : index
    %c0_37 = arith.constant 0 : index
    %102 = vector.load %arg7[%c0_36, %c0_37] : memref<384x128xf32, #tpu.memory_space<vmem>>, vector<8x128xf32>
    tpu.vector_store %arg7[%c0_36, %c0_37], %101 {strides = array<i32>} : memref<384x128xf32, #tpu.memory_space<vmem>>, vector<8x128xf32>,
    %c1_38 = arith.constant 1 : index
    %c0_39 = arith.constant 0 : index
    %103 = vector.load %arg2[%c1_38, %c0_39] : memref<48x128xi32, #tpu.memory_space<vmem>>, vector<1x128xi32>
    %104 = vector.broadcast %103 : vector<1x128xi32> to vector<8x128xi32>
    %105 = arith.cmpi eq, %104, %0 : vector<8x128xi32>
    %106 = arith.extui %105 : vector<8x128xi1> to vector<8x128xi32>
    %107 = arith.sitofp %106 : vector<8x128xi32> to vector<8x128xf32>
    %c8_40 = arith.constant 8 : index
    %c0_41 = arith.constant 0 : index
    %108 = vector.load %arg7[%c8_40, %c0_41] : memref<384x128xf32, #tpu.memory_space<vmem>>, vector<8x128xf32>
    tpu.vector_store %arg7[%c8_40, %c0_41], %107 {strides = array<i32>} : memref<384x128xf32, #tpu.memory_space<vmem>>, vector<8x128xf32>,
    %c2_42 = arith.constant 2 : index
    %c0_43 = arith.constant 0 : index
    %109 = vector.load %arg2[%c2_42, %c0_43] : memref<48x128xi32, #tpu.memory_space<vmem>>, vector<1x128xi32>
    %110 = vector.broadcast %109 : vector<1x128xi32> to vector<8x128xi32>
    %111 = arith.cmpi eq, %110, %0 : vector<8x128xi32>
    %112 = arith.extui %111 : vector<8x128xi1> to vector<8x128xi32>
    %113 = arith.sitofp %112 : vector<8x128xi32> to vector<8x128xf32>
    %c16_44 = arith.constant 16 : index
    %c0_45 = arith.constant 0 : index
    %114 = vector.load %arg7[%c16_44, %c0_45] : memref<384x128xf32, #tpu.memory_space<vmem>>, vector<8x128xf32>
    tpu.vector_store %arg7[%c16_44, %c0_45], %113 {strides = array<i32>} : memref<384x128xf32, #tpu.memory_space<vmem>>, vector<8x128xf32>,
    %c3_46 = arith.constant 3 : index
    %c0_47 = arith.constant 0 : index
    %115 = vector.load %arg2[%c3_46, %c0_47] : memref<48x128xi32, #tpu.memory_space<vmem>>, vector<1x128xi32>
    %116 = vector.broadcast %115 : vector<1x128xi32> to vector<8x128xi32>
    %117 = arith.cmpi eq, %116, %0 : vector<8x128xi32>
    %118 = arith.extui %117 : vector<8x128xi1> to vector<8x128xi32>
    %119 = arith.sitofp %118 : vector<8x128xi32> to vector<8x128xf32>
    %c24_48 = arith.constant 24 : index
    %c0_49 = arith.constant 0 : index
    %120 = vector.load %arg7[%c24_48, %c0_49] : memref<384x128xf32, #tpu.memory_space<vmem>>, vector<8x128xf32>
    tpu.vector_store %arg7[%c24_48, %c0_49], %119 {strides = array<i32>} : memref<384x128xf32, #tpu.memory_space<vmem>>, vector<8x128xf32>,
    %c4_50 = arith.constant 4 : index
    %c0_51 = arith.constant 0 : index
    %121 = vector.load %arg2[%c4_50, %c0_51] : memref<48x128xi32, #tpu.memory_space<vmem>>, vector<1x128xi32>
    %122 = vector.broadcast %121 : vector<1x128xi32> to vector<8x128xi32>
    %123 = arith.cmpi eq, %122, %0 : vector<8x128xi32>
    %124 = arith.extui %123 : vector<8x128xi1> to vector<8x128xi32>
    %125 = arith.sitofp %124 : vector<8x128xi32> to vector<8x128xf32>
    %c32_52 = arith.constant 32 : index
    %c0_53 = arith.constant 0 : index
    %126 = vector.load %arg7[%c32_52, %c0_53] : memref<384x128xf32, #tpu.memory_space<vmem>>, vector<8x128xf32>
    tpu.vector_store %arg7[%c32_52, %c0_53], %125 {strides = array<i32>} : memref<384x128xf32, #tpu.memory_space<vmem>>, vector<8x128xf32>,
    %c5_54 = arith.constant 5 : index
    %c0_55 = arith.constant 0 : index
    %127 = vector.load %arg2[%c5_54, %c0_55] : memref<48x128xi32, #tpu.memory_space<vmem>>, vector<1x128xi32>
    %128 = vector.broadcast %127 : vector<1x128xi32> to vector<8x128xi32>
    %129 = arith.cmpi eq, %128, %0 : vector<8x128xi32>
    %130 = arith.extui %129 : vector<8x128xi1> to vector<8x128xi32>
    %131 = arith.sitofp %130 : vector<8x128xi32> to vector<8x128xf32>
    %c40_56 = arith.constant 40 : index
    %c0_57 = arith.constant 0 : index
    %132 = vector.load %arg7[%c40_56, %c0_57] : memref<384x128xf32, #tpu.memory_space<vmem>>, vector<8x128xf32>
    tpu.vector_store %arg7[%c40_56, %c0_57], %131 {strides = array<i32>} : memref<384x128xf32, #tpu.memory_space<vmem>>, vector<8x128xf32>,
    %c6_58 = arith.constant 6 : index
    %c0_59 = arith.constant 0 : index
    %133 = vector.load %arg2[%c6_58, %c0_59] : memref<48x128xi32, #tpu.memory_space<vmem>>, vector<1x128xi32>
    %134 = vector.broadcast %133 : vector<1x128xi32> to vector<8x128xi32>
    %135 = arith.cmpi eq, %134, %0 : vector<8x128xi32>
    %136 = arith.extui %135 : vector<8x128xi1> to vector<8x128xi32>
    %137 = arith.sitofp %136 : vector<8x128xi32> to vector<8x128xf32>
    %c48_60 = arith.constant 48 : index
    %c0_61 = arith.constant 0 : index
    %138 = vector.load %arg7[%c48_60, %c0_61] : memref<384x128xf32, #tpu.memory_space<vmem>>, vector<8x128xf32>
    tpu.vector_store %arg7[%c48_60, %c0_61], %137 {strides = array<i32>} : memref<384x128xf32, #tpu.memory_space<vmem>>, vector<8x128xf32>,
    %c7_62 = arith.constant 7 : index
    %c0_63 = arith.constant 0 : index
    %139 = vector.load %arg2[%c7_62, %c0_63] : memref<48x128xi32, #tpu.memory_space<vmem>>, vector<1x128xi32>
    %140 = vector.broadcast %139 : vector<1x128xi32> to vector<8x128xi32>
    %141 = arith.cmpi eq, %140, %0 : vector<8x128xi32>
    %142 = arith.extui %141 : vector<8x128xi1> to vector<8x128xi32>
    %143 = arith.sitofp %142 : vector<8x128xi32> to vector<8x128xf32>
    %c56_64 = arith.constant 56 : index
    %c0_65 = arith.constant 0 : index
    %144 = vector.load %arg7[%c56_64, %c0_65] : memref<384x128xf32, #tpu.memory_space<vmem>>, vector<8x128xf32>
    tpu.vector_store %arg7[%c56_64, %c0_65], %143 {strides = array<i32>} : memref<384x128xf32, #tpu.memory_space<vmem>>, vector<8x128xf32>,
    %c8_66 = arith.constant 8 : index
    %c0_67 = arith.constant 0 : index
    %145 = vector.load %arg2[%c8_66, %c0_67] : memref<48x128xi32, #tpu.memory_space<vmem>>, vector<1x128xi32>
    %146 = vector.broadcast %145 : vector<1x128xi32> to vector<8x128xi32>
    %147 = arith.cmpi eq, %146, %0 : vector<8x128xi32>
    %148 = arith.extui %147 : vector<8x128xi1> to vector<8x128xi32>
    %149 = arith.sitofp %148 : vector<8x128xi32> to vector<8x128xf32>
    %c64_68 = arith.constant 64 : index
    %c0_69 = arith.constant 0 : index
    %150 = vector.load %arg7[%c64_68, %c0_69] : memref<384x128xf32, #tpu.memory_space<vmem>>, vector<8x128xf32>
    tpu.vector_store %arg7[%c64_68, %c0_69], %149 {strides = array<i32>} : memref<384x128xf32, #tpu.memory_space<vmem>>, vector<8x128xf32>,
    %c9_70 = arith.constant 9 : index
    %c0_71 = arith.constant 0 : index
    %151 = vector.load %arg2[%c9_70, %c0_71] : memref<48x128xi32, #tpu.memory_space<vmem>>, vector<1x128xi32>
    %152 = vector.broadcast %151 : vector<1x128xi32> to vector<8x128xi32>
    %153 = arith.cmpi eq, %152, %0 : vector<8x128xi32>
    %154 = arith.extui %153 : vector<8x128xi1> to vector<8x128xi32>
    %155 = arith.sitofp %154 : vector<8x128xi32> to vector<8x128xf32>
    %c72_72 = arith.constant 72 : index
    %c0_73 = arith.constant 0 : index
    %156 = vector.load %arg7[%c72_72, %c0_73] : memref<384x128xf32, #tpu.memory_space<vmem>>, vector<8x128xf32>
    tpu.vector_store %arg7[%c72_72, %c0_73], %155 {strides = array<i32>} : memref<384x128xf32, #tpu.memory_space<vmem>>, vector<8x128xf32>,
    %c10_74 = arith.constant 10 : index
    %c0_75 = arith.constant 0 : index
    %157 = vector.load %arg2[%c10_74, %c0_75] : memref<48x128xi32, #tpu.memory_space<vmem>>, vector<1x128xi32>
    %158 = vector.broadcast %157 : vector<1x128xi32> to vector<8x128xi32>
    %159 = arith.cmpi eq, %158, %0 : vector<8x128xi32>
    %160 = arith.extui %159 : vector<8x128xi1> to vector<8x128xi32>
    %161 = arith.sitofp %160 : vector<8x128xi32> to vector<8x128xf32>
    %c80_76 = arith.constant 80 : index
    %c0_77 = arith.constant 0 : index
    %162 = vector.load %arg7[%c80_76, %c0_77] : memref<384x128xf32, #tpu.memory_space<vmem>>, vector<8x128xf32>
    tpu.vector_store %arg7[%c80_76, %c0_77], %161 {strides = array<i32>} : memref<384x128xf32, #tpu.memory_space<vmem>>, vector<8x128xf32>,
    %c11_78 = arith.constant 11 : index
    %c0_79 = arith.constant 0 : index
    %163 = vector.load %arg2[%c11_78, %c0_79] : memref<48x128xi32, #tpu.memory_space<vmem>>, vector<1x128xi32>
    %164 = vector.broadcast %163 : vector<1x128xi32> to vector<8x128xi32>
    %165 = arith.cmpi eq, %164, %0 : vector<8x128xi32>
    %166 = arith.extui %165 : vector<8x128xi1> to vector<8x128xi32>
    %167 = arith.sitofp %166 : vector<8x128xi32> to vector<8x128xf32>
    %c88_80 = arith.constant 88 : index
    %c0_81 = arith.constant 0 : index
    %168 = vector.load %arg7[%c88_80, %c0_81] : memref<384x128xf32, #tpu.memory_space<vmem>>, vector<8x128xf32>
    tpu.vector_store %arg7[%c88_80, %c0_81], %167 {strides = array<i32>} : memref<384x128xf32, #tpu.memory_space<vmem>>, vector<8x128xf32>,
    %c12_82 = arith.constant 12 : index
    %c0_83 = arith.constant 0 : index
    %169 = vector.load %arg2[%c12_82, %c0_83] : memref<48x128xi32, #tpu.memory_space<vmem>>, vector<1x128xi32>
    %170 = vector.broadcast %169 : vector<1x128xi32> to vector<8x128xi32>
    %171 = arith.cmpi eq, %170, %0 : vector<8x128xi32>
    %172 = arith.extui %171 : vector<8x128xi1> to vector<8x128xi32>
    %173 = arith.sitofp %172 : vector<8x128xi32> to vector<8x128xf32>
    %c96_84 = arith.constant 96 : index
    %c0_85 = arith.constant 0 : index
    %174 = vector.load %arg7[%c96_84, %c0_85] : memref<384x128xf32, #tpu.memory_space<vmem>>, vector<8x128xf32>
    tpu.vector_store %arg7[%c96_84, %c0_85], %173 {strides = array<i32>} : memref<384x128xf32, #tpu.memory_space<vmem>>, vector<8x128xf32>,
    %c13_86 = arith.constant 13 : index
    %c0_87 = arith.constant 0 : index
    %175 = vector.load %arg2[%c13_86, %c0_87] : memref<48x128xi32, #tpu.memory_space<vmem>>, vector<1x128xi32>
    %176 = vector.broadcast %175 : vector<1x128xi32> to vector<8x128xi32>
    %177 = arith.cmpi eq, %176, %0 : vector<8x128xi32>
    %178 = arith.extui %177 : vector<8x128xi1> to vector<8x128xi32>
    %179 = arith.sitofp %178 : vector<8x128xi32> to vector<8x128xf32>
    %c104_88 = arith.constant 104 : index
    %c0_89 = arith.constant 0 : index
    %180 = vector.load %arg7[%c104_88, %c0_89] : memref<384x128xf32, #tpu.memory_space<vmem>>, vector<8x128xf32>
    tpu.vector_store %arg7[%c104_88, %c0_89], %179 {strides = array<i32>} : memref<384x128xf32, #tpu.memory_space<vmem>>, vector<8x128xf32>,
    %c14_90 = arith.constant 14 : index
    %c0_91 = arith.constant 0 : index
    %181 = vector.load %arg2[%c14_90, %c0_91] : memref<48x128xi32, #tpu.memory_space<vmem>>, vector<1x128xi32>
    %182 = vector.broadcast %181 : vector<1x128xi32> to vector<8x128xi32>
    %183 = arith.cmpi eq, %182, %0 : vector<8x128xi32>
    %184 = arith.extui %183 : vector<8x128xi1> to vector<8x128xi32>
    %185 = arith.sitofp %184 : vector<8x128xi32> to vector<8x128xf32>
    %c112_92 = arith.constant 112 : index
    %c0_93 = arith.constant 0 : index
    %186 = vector.load %arg7[%c112_92, %c0_93] : memref<384x128xf32, #tpu.memory_space<vmem>>, vector<8x128xf32>
    tpu.vector_store %arg7[%c112_92, %c0_93], %185 {strides = array<i32>} : memref<384x128xf32, #tpu.memory_space<vmem>>, vector<8x128xf32>,
    %c15_94 = arith.constant 15 : index
    %c0_95 = arith.constant 0 : index
    %187 = vector.load %arg2[%c15_94, %c0_95] : memref<48x128xi32, #tpu.memory_space<vmem>>, vector<1x128xi32>
    %188 = vector.broadcast %187 : vector<1x128xi32> to vector<8x128xi32>
    %189 = arith.cmpi eq, %188, %0 : vector<8x128xi32>
    %190 = arith.extui %189 : vector<8x128xi1> to vector<8x128xi32>
    %191 = arith.sitofp %190 : vector<8x128xi32> to vector<8x128xf32>
    %c120_96 = arith.constant 120 : index
    %c0_97 = arith.constant 0 : index
    %192 = vector.load %arg7[%c120_96, %c0_97] : memref<384x128xf32, #tpu.memory_space<vmem>>, vector<8x128xf32>
    tpu.vector_store %arg7[%c120_96, %c0_97], %191 {strides = array<i32>} : memref<384x128xf32, #tpu.memory_space<vmem>>, vector<8x128xf32>,
    %c16_98 = arith.constant 16 : index
    %c0_99 = arith.constant 0 : index
    %193 = vector.load %arg2[%c16_98, %c0_99] : memref<48x128xi32, #tpu.memory_space<vmem>>, vector<1x128xi32>
    %194 = vector.broadcast %193 : vector<1x128xi32> to vector<8x128xi32>
    %195 = arith.cmpi eq, %194, %0 : vector<8x128xi32>
    %196 = arith.extui %195 : vector<8x128xi1> to vector<8x128xi32>
    %197 = arith.sitofp %196 : vector<8x128xi32> to vector<8x128xf32>
    %c128 = arith.constant 128 : index
    %c0_100 = arith.constant 0 : index
    %198 = vector.load %arg7[%c128, %c0_100] : memref<384x128xf32, #tpu.memory_space<vmem>>, vector<8x128xf32>
    tpu.vector_store %arg7[%c128, %c0_100], %197 {strides = array<i32>} : memref<384x128xf32, #tpu.memory_space<vmem>>, vector<8x128xf32>,
    %c17 = arith.constant 17 : index
    %c0_101 = arith.constant 0 : index
    %199 = vector.load %arg2[%c17, %c0_101] : memref<48x128xi32, #tpu.memory_space<vmem>>, vector<1x128xi32>
    %200 = vector.broadcast %199 : vector<1x128xi32> to vector<8x128xi32>
    %201 = arith.cmpi eq, %200, %0 : vector<8x128xi32>
    %202 = arith.extui %201 : vector<8x128xi1> to vector<8x128xi32>
    %203 = arith.sitofp %202 : vector<8x128xi32> to vector<8x128xf32>
    %c136 = arith.constant 136 : index
    %c0_102 = arith.constant 0 : index
    %204 = vector.load %arg7[%c136, %c0_102] : memref<384x128xf32, #tpu.memory_space<vmem>>, vector<8x128xf32>
    tpu.vector_store %arg7[%c136, %c0_102], %203 {strides = array<i32>} : memref<384x128xf32, #tpu.memory_space<vmem>>, vector<8x128xf32>,
    %c18 = arith.constant 18 : index
    %c0_103 = arith.constant 0 : index
    %205 = vector.load %arg2[%c18, %c0_103] : memref<48x128xi32, #tpu.memory_space<vmem>>, vector<1x128xi32>
    %206 = vector.broadcast %205 : vector<1x128xi32> to vector<8x128xi32>
    %207 = arith.cmpi eq, %206, %0 : vector<8x128xi32>
    %208 = arith.extui %207 : vector<8x128xi1> to vector<8x128xi32>
    %209 = arith.sitofp %208 : vector<8x128xi32> to vector<8x128xf32>
    %c144 = arith.constant 144 : index
    %c0_104 = arith.constant 0 : index
    %210 = vector.load %arg7[%c144, %c0_104] : memref<384x128xf32, #tpu.memory_space<vmem>>, vector<8x128xf32>
    tpu.vector_store %arg7[%c144, %c0_104], %209 {strides = array<i32>} : memref<384x128xf32, #tpu.memory_space<vmem>>, vector<8x128xf32>,
    %c19 = arith.constant 19 : index
    %c0_105 = arith.constant 0 : index
    %211 = vector.load %arg2[%c19, %c0_105] : memref<48x128xi32, #tpu.memory_space<vmem>>, vector<1x128xi32>
    %212 = vector.broadcast %211 : vector<1x128xi32> to vector<8x128xi32>
    %213 = arith.cmpi eq, %212, %0 : vector<8x128xi32>
    %214 = arith.extui %213 : vector<8x128xi1> to vector<8x128xi32>
    %215 = arith.sitofp %214 : vector<8x128xi32> to vector<8x128xf32>
    %c152 = arith.constant 152 : index
    %c0_106 = arith.constant 0 : index
    %216 = vector.load %arg7[%c152, %c0_106] : memref<384x128xf32, #tpu.memory_space<vmem>>, vector<8x128xf32>
    tpu.vector_store %arg7[%c152, %c0_106], %215 {strides = array<i32>} : memref<384x128xf32, #tpu.memory_space<vmem>>, vector<8x128xf32>,
    %c20 = arith.constant 20 : index
    %c0_107 = arith.constant 0 : index
    %217 = vector.load %arg2[%c20, %c0_107] : memref<48x128xi32, #tpu.memory_space<vmem>>, vector<1x128xi32>
    %218 = vector.broadcast %217 : vector<1x128xi32> to vector<8x128xi32>
    %219 = arith.cmpi eq, %218, %0 : vector<8x128xi32>
    %220 = arith.extui %219 : vector<8x128xi1> to vector<8x128xi32>
    %221 = arith.sitofp %220 : vector<8x128xi32> to vector<8x128xf32>
    %c160 = arith.constant 160 : index
    %c0_108 = arith.constant 0 : index
    %222 = vector.load %arg7[%c160, %c0_108] : memref<384x128xf32, #tpu.memory_space<vmem>>, vector<8x128xf32>
    tpu.vector_store %arg7[%c160, %c0_108], %221 {strides = array<i32>} : memref<384x128xf32, #tpu.memory_space<vmem>>, vector<8x128xf32>,
    %c21 = arith.constant 21 : index
    %c0_109 = arith.constant 0 : index
    %223 = vector.load %arg2[%c21, %c0_109] : memref<48x128xi32, #tpu.memory_space<vmem>>, vector<1x128xi32>
    %224 = vector.broadcast %223 : vector<1x128xi32> to vector<8x128xi32>
    %225 = arith.cmpi eq, %224, %0 : vector<8x128xi32>
    %226 = arith.extui %225 : vector<8x128xi1> to vector<8x128xi32>
    %227 = arith.sitofp %226 : vector<8x128xi32> to vector<8x128xf32>
    %c168 = arith.constant 168 : index
    %c0_110 = arith.constant 0 : index
    %228 = vector.load %arg7[%c168, %c0_110] : memref<384x128xf32, #tpu.memory_space<vmem>>, vector<8x128xf32>
    tpu.vector_store %arg7[%c168, %c0_110], %227 {strides = array<i32>} : memref<384x128xf32, #tpu.memory_space<vmem>>, vector<8x128xf32>,
    %c22 = arith.constant 22 : index
    %c0_111 = arith.constant 0 : index
    %229 = vector.load %arg2[%c22, %c0_111] : memref<48x128xi32, #tpu.memory_space<vmem>>, vector<1x128xi32>
    %230 = vector.broadcast %229 : vector<1x128xi32> to vector<8x128xi32>
    %231 = arith.cmpi eq, %230, %0 : vector<8x128xi32>
    %232 = arith.extui %231 : vector<8x128xi1> to vector<8x128xi32>
    %233 = arith.sitofp %232 : vector<8x128xi32> to vector<8x128xf32>
    %c176 = arith.constant 176 : index
    %c0_112 = arith.constant 0 : index
    %234 = vector.load %arg7[%c176, %c0_112] : memref<384x128xf32, #tpu.memory_space<vmem>>, vector<8x128xf32>
    tpu.vector_store %arg7[%c176, %c0_112], %233 {strides = array<i32>} : memref<384x128xf32, #tpu.memory_space<vmem>>, vector<8x128xf32>,
    %c23 = arith.constant 23 : index
    %c0_113 = arith.constant 0 : index
    %235 = vector.load %arg2[%c23, %c0_113] : memref<48x128xi32, #tpu.memory_space<vmem>>, vector<1x128xi32>
    %236 = vector.broadcast %235 : vector<1x128xi32> to vector<8x128xi32>
    %237 = arith.cmpi eq, %236, %0 : vector<8x128xi32>
    %238 = arith.extui %237 : vector<8x128xi1> to vector<8x128xi32>
    %239 = arith.sitofp %238 : vector<8x128xi32> to vector<8x128xf32>
    %c184 = arith.constant 184 : index
    %c0_114 = arith.constant 0 : index
    %240 = vector.load %arg7[%c184, %c0_114] : memref<384x128xf32, #tpu.memory_space<vmem>>, vector<8x128xf32>
    tpu.vector_store %arg7[%c184, %c0_114], %239 {strides = array<i32>} : memref<384x128xf32, #tpu.memory_space<vmem>>, vector<8x128xf32>,
    %c24_115 = arith.constant 24 : index
    %c0_116 = arith.constant 0 : index
    %241 = vector.load %arg2[%c24_115, %c0_116] : memref<48x128xi32, #tpu.memory_space<vmem>>, vector<1x128xi32>
    %242 = vector.broadcast %241 : vector<1x128xi32> to vector<8x128xi32>
    %243 = arith.cmpi eq, %242, %0 : vector<8x128xi32>
    %244 = arith.extui %243 : vector<8x128xi1> to vector<8x128xi32>
    %245 = arith.sitofp %244 : vector<8x128xi32> to vector<8x128xf32>
    %c192 = arith.constant 192 : index
    %c0_117 = arith.constant 0 : index
    %246 = vector.load %arg7[%c192, %c0_117] : memref<384x128xf32, #tpu.memory_space<vmem>>, vector<8x128xf32>
    tpu.vector_store %arg7[%c192, %c0_117], %245 {strides = array<i32>} : memref<384x128xf32, #tpu.memory_space<vmem>>, vector<8x128xf32>,
    %c25 = arith.constant 25 : index
    %c0_118 = arith.constant 0 : index
    %247 = vector.load %arg2[%c25, %c0_118] : memref<48x128xi32, #tpu.memory_space<vmem>>, vector<1x128xi32>
    %248 = vector.broadcast %247 : vector<1x128xi32> to vector<8x128xi32>
    %249 = arith.cmpi eq, %248, %0 : vector<8x128xi32>
    %250 = arith.extui %249 : vector<8x128xi1> to vector<8x128xi32>
    %251 = arith.sitofp %250 : vector<8x128xi32> to vector<8x128xf32>
    %c200 = arith.constant 200 : index
    %c0_119 = arith.constant 0 : index
    %252 = vector.load %arg7[%c200, %c0_119] : memref<384x128xf32, #tpu.memory_space<vmem>>, vector<8x128xf32>
    tpu.vector_store %arg7[%c200, %c0_119], %251 {strides = array<i32>} : memref<384x128xf32, #tpu.memory_space<vmem>>, vector<8x128xf32>,
    %c26 = arith.constant 26 : index
    %c0_120 = arith.constant 0 : index
    %253 = vector.load %arg2[%c26, %c0_120] : memref<48x128xi32, #tpu.memory_space<vmem>>, vector<1x128xi32>
    %254 = vector.broadcast %253 : vector<1x128xi32> to vector<8x128xi32>
    %255 = arith.cmpi eq, %254, %0 : vector<8x128xi32>
    %256 = arith.extui %255 : vector<8x128xi1> to vector<8x128xi32>
    %257 = arith.sitofp %256 : vector<8x128xi32> to vector<8x128xf32>
    %c208 = arith.constant 208 : index
    %c0_121 = arith.constant 0 : index
    %258 = vector.load %arg7[%c208, %c0_121] : memref<384x128xf32, #tpu.memory_space<vmem>>, vector<8x128xf32>
    tpu.vector_store %arg7[%c208, %c0_121], %257 {strides = array<i32>} : memref<384x128xf32, #tpu.memory_space<vmem>>, vector<8x128xf32>,
    %c27 = arith.constant 27 : index
    %c0_122 = arith.constant 0 : index
    %259 = vector.load %arg2[%c27, %c0_122] : memref<48x128xi32, #tpu.memory_space<vmem>>, vector<1x128xi32>
    %260 = vector.broadcast %259 : vector<1x128xi32> to vector<8x128xi32>
    %261 = arith.cmpi eq, %260, %0 : vector<8x128xi32>
    %262 = arith.extui %261 : vector<8x128xi1> to vector<8x128xi32>
    %263 = arith.sitofp %262 : vector<8x128xi32> to vector<8x128xf32>
    %c216 = arith.constant 216 : index
    %c0_123 = arith.constant 0 : index
    %264 = vector.load %arg7[%c216, %c0_123] : memref<384x128xf32, #tpu.memory_space<vmem>>, vector<8x128xf32>
    tpu.vector_store %arg7[%c216, %c0_123], %263 {strides = array<i32>} : memref<384x128xf32, #tpu.memory_space<vmem>>, vector<8x128xf32>,
    %c28 = arith.constant 28 : index
    %c0_124 = arith.constant 0 : index
    %265 = vector.load %arg2[%c28, %c0_124] : memref<48x128xi32, #tpu.memory_space<vmem>>, vector<1x128xi32>
    %266 = vector.broadcast %265 : vector<1x128xi32> to vector<8x128xi32>
    %267 = arith.cmpi eq, %266, %0 : vector<8x128xi32>
    %268 = arith.extui %267 : vector<8x128xi1> to vector<8x128xi32>
    %269 = arith.sitofp %268 : vector<8x128xi32> to vector<8x128xf32>
    %c224 = arith.constant 224 : index
    %c0_125 = arith.constant 0 : index
    %270 = vector.load %arg7[%c224, %c0_125] : memref<384x128xf32, #tpu.memory_space<vmem>>, vector<8x128xf32>
    tpu.vector_store %arg7[%c224, %c0_125], %269 {strides = array<i32>} : memref<384x128xf32, #tpu.memory_space<vmem>>, vector<8x128xf32>,
    %c29 = arith.constant 29 : index
    %c0_126 = arith.constant 0 : index
    %271 = vector.load %arg2[%c29, %c0_126] : memref<48x128xi32, #tpu.memory_space<vmem>>, vector<1x128xi32>
    %272 = vector.broadcast %271 : vector<1x128xi32> to vector<8x128xi32>
    %273 = arith.cmpi eq, %272, %0 : vector<8x128xi32>
    %274 = arith.extui %273 : vector<8x128xi1> to vector<8x128xi32>
    %275 = arith.sitofp %274 : vector<8x128xi32> to vector<8x128xf32>
    %c232 = arith.constant 232 : index
    %c0_127 = arith.constant 0 : index
    %276 = vector.load %arg7[%c232, %c0_127] : memref<384x128xf32, #tpu.memory_space<vmem>>, vector<8x128xf32>
    tpu.vector_store %arg7[%c232, %c0_127], %275 {strides = array<i32>} : memref<384x128xf32, #tpu.memory_space<vmem>>, vector<8x128xf32>,
    %c30 = arith.constant 30 : index
    %c0_128 = arith.constant 0 : index
    %277 = vector.load %arg2[%c30, %c0_128] : memref<48x128xi32, #tpu.memory_space<vmem>>, vector<1x128xi32>
    %278 = vector.broadcast %277 : vector<1x128xi32> to vector<8x128xi32>
    %279 = arith.cmpi eq, %278, %0 : vector<8x128xi32>
    %280 = arith.extui %279 : vector<8x128xi1> to vector<8x128xi32>
    %281 = arith.sitofp %280 : vector<8x128xi32> to vector<8x128xf32>
    %c240 = arith.constant 240 : index
    %c0_129 = arith.constant 0 : index
    %282 = vector.load %arg7[%c240, %c0_129] : memref<384x128xf32, #tpu.memory_space<vmem>>, vector<8x128xf32>
    tpu.vector_store %arg7[%c240, %c0_129], %281 {strides = array<i32>} : memref<384x128xf32, #tpu.memory_space<vmem>>, vector<8x128xf32>,
    %c31 = arith.constant 31 : index
    %c0_130 = arith.constant 0 : index
    %283 = vector.load %arg2[%c31, %c0_130] : memref<48x128xi32, #tpu.memory_space<vmem>>, vector<1x128xi32>
    %284 = vector.broadcast %283 : vector<1x128xi32> to vector<8x128xi32>
    %285 = arith.cmpi eq, %284, %0 : vector<8x128xi32>
    %286 = arith.extui %285 : vector<8x128xi1> to vector<8x128xi32>
    %287 = arith.sitofp %286 : vector<8x128xi32> to vector<8x128xf32>
    %c248 = arith.constant 248 : index
    %c0_131 = arith.constant 0 : index
    %288 = vector.load %arg7[%c248, %c0_131] : memref<384x128xf32, #tpu.memory_space<vmem>>, vector<8x128xf32>
    tpu.vector_store %arg7[%c248, %c0_131], %287 {strides = array<i32>} : memref<384x128xf32, #tpu.memory_space<vmem>>, vector<8x128xf32>,
    %c32_132 = arith.constant 32 : index
    %c0_133 = arith.constant 0 : index
    %289 = vector.load %arg2[%c32_132, %c0_133] : memref<48x128xi32, #tpu.memory_space<vmem>>, vector<1x128xi32>
    %290 = vector.broadcast %289 : vector<1x128xi32> to vector<8x128xi32>
    %291 = arith.cmpi eq, %290, %0 : vector<8x128xi32>
    %292 = arith.extui %291 : vector<8x128xi1> to vector<8x128xi32>
    %293 = arith.sitofp %292 : vector<8x128xi32> to vector<8x128xf32>
    %c256 = arith.constant 256 : index
    %c0_134 = arith.constant 0 : index
    %294 = vector.load %arg7[%c256, %c0_134] : memref<384x128xf32, #tpu.memory_space<vmem>>, vector<8x128xf32>
    tpu.vector_store %arg7[%c256, %c0_134], %293 {strides = array<i32>} : memref<384x128xf32, #tpu.memory_space<vmem>>, vector<8x128xf32>,
    %c33 = arith.constant 33 : index
    %c0_135 = arith.constant 0 : index
    %295 = vector.load %arg2[%c33, %c0_135] : memref<48x128xi32, #tpu.memory_space<vmem>>, vector<1x128xi32>
    %296 = vector.broadcast %295 : vector<1x128xi32> to vector<8x128xi32>
    %297 = arith.cmpi eq, %296, %0 : vector<8x128xi32>
    %298 = arith.extui %297 : vector<8x128xi1> to vector<8x128xi32>
    %299 = arith.sitofp %298 : vector<8x128xi32> to vector<8x128xf32>
    %c264 = arith.constant 264 : index
    %c0_136 = arith.constant 0 : index
    %300 = vector.load %arg7[%c264, %c0_136] : memref<384x128xf32, #tpu.memory_space<vmem>>, vector<8x128xf32>
    tpu.vector_store %arg7[%c264, %c0_136], %299 {strides = array<i32>} : memref<384x128xf32, #tpu.memory_space<vmem>>, vector<8x128xf32>,
    %c34 = arith.constant 34 : index
    %c0_137 = arith.constant 0 : index
    %301 = vector.load %arg2[%c34, %c0_137] : memref<48x128xi32, #tpu.memory_space<vmem>>, vector<1x128xi32>
    %302 = vector.broadcast %301 : vector<1x128xi32> to vector<8x128xi32>
    %303 = arith.cmpi eq, %302, %0 : vector<8x128xi32>
    %304 = arith.extui %303 : vector<8x128xi1> to vector<8x128xi32>
    %305 = arith.sitofp %304 : vector<8x128xi32> to vector<8x128xf32>
    %c272 = arith.constant 272 : index
    %c0_138 = arith.constant 0 : index
    %306 = vector.load %arg7[%c272, %c0_138] : memref<384x128xf32, #tpu.memory_space<vmem>>, vector<8x128xf32>
    tpu.vector_store %arg7[%c272, %c0_138], %305 {strides = array<i32>} : memref<384x128xf32, #tpu.memory_space<vmem>>, vector<8x128xf32>,
    %c35 = arith.constant 35 : index
    %c0_139 = arith.constant 0 : index
    %307 = vector.load %arg2[%c35, %c0_139] : memref<48x128xi32, #tpu.memory_space<vmem>>, vector<1x128xi32>
    %308 = vector.broadcast %307 : vector<1x128xi32> to vector<8x128xi32>
    %309 = arith.cmpi eq, %308, %0 : vector<8x128xi32>
    %310 = arith.extui %309 : vector<8x128xi1> to vector<8x128xi32>
    %311 = arith.sitofp %310 : vector<8x128xi32> to vector<8x128xf32>
    %c280 = arith.constant 280 : index
    %c0_140 = arith.constant 0 : index
    %312 = vector.load %arg7[%c280, %c0_140] : memref<384x128xf32, #tpu.memory_space<vmem>>, vector<8x128xf32>
    tpu.vector_store %arg7[%c280, %c0_140], %311 {strides = array<i32>} : memref<384x128xf32, #tpu.memory_space<vmem>>, vector<8x128xf32>,
    %c36 = arith.constant 36 : index
    %c0_141 = arith.constant 0 : index
    %313 = vector.load %arg2[%c36, %c0_141] : memref<48x128xi32, #tpu.memory_space<vmem>>, vector<1x128xi32>
    %314 = vector.broadcast %313 : vector<1x128xi32> to vector<8x128xi32>
    %315 = arith.cmpi eq, %314, %0 : vector<8x128xi32>
    %316 = arith.extui %315 : vector<8x128xi1> to vector<8x128xi32>
    %317 = arith.sitofp %316 : vector<8x128xi32> to vector<8x128xf32>
    %c288 = arith.constant 288 : index
    %c0_142 = arith.constant 0 : index
    %318 = vector.load %arg7[%c288, %c0_142] : memref<384x128xf32, #tpu.memory_space<vmem>>, vector<8x128xf32>
    tpu.vector_store %arg7[%c288, %c0_142], %317 {strides = array<i32>} : memref<384x128xf32, #tpu.memory_space<vmem>>, vector<8x128xf32>,
    %c37 = arith.constant 37 : index
    %c0_143 = arith.constant 0 : index
    %319 = vector.load %arg2[%c37, %c0_143] : memref<48x128xi32, #tpu.memory_space<vmem>>, vector<1x128xi32>
    %320 = vector.broadcast %319 : vector<1x128xi32> to vector<8x128xi32>
    %321 = arith.cmpi eq, %320, %0 : vector<8x128xi32>
    %322 = arith.extui %321 : vector<8x128xi1> to vector<8x128xi32>
    %323 = arith.sitofp %322 : vector<8x128xi32> to vector<8x128xf32>
    %c296 = arith.constant 296 : index
    %c0_144 = arith.constant 0 : index
    %324 = vector.load %arg7[%c296, %c0_144] : memref<384x128xf32, #tpu.memory_space<vmem>>, vector<8x128xf32>
    tpu.vector_store %arg7[%c296, %c0_144], %323 {strides = array<i32>} : memref<384x128xf32, #tpu.memory_space<vmem>>, vector<8x128xf32>,
    %c38 = arith.constant 38 : index
    %c0_145 = arith.constant 0 : index
    %325 = vector.load %arg2[%c38, %c0_145] : memref<48x128xi32, #tpu.memory_space<vmem>>, vector<1x128xi32>
    %326 = vector.broadcast %325 : vector<1x128xi32> to vector<8x128xi32>
    %327 = arith.cmpi eq, %326, %0 : vector<8x128xi32>
    %328 = arith.extui %327 : vector<8x128xi1> to vector<8x128xi32>
    %329 = arith.sitofp %328 : vector<8x128xi32> to vector<8x128xf32>
    %c304 = arith.constant 304 : index
    %c0_146 = arith.constant 0 : index
    %330 = vector.load %arg7[%c304, %c0_146] : memref<384x128xf32, #tpu.memory_space<vmem>>, vector<8x128xf32>
    tpu.vector_store %arg7[%c304, %c0_146], %329 {strides = array<i32>} : memref<384x128xf32, #tpu.memory_space<vmem>>, vector<8x128xf32>,
    %c39 = arith.constant 39 : index
    %c0_147 = arith.constant 0 : index
    %331 = vector.load %arg2[%c39, %c0_147] : memref<48x128xi32, #tpu.memory_space<vmem>>, vector<1x128xi32>
    %332 = vector.broadcast %331 : vector<1x128xi32> to vector<8x128xi32>
    %333 = arith.cmpi eq, %332, %0 : vector<8x128xi32>
    %334 = arith.extui %333 : vector<8x128xi1> to vector<8x128xi32>
    %335 = arith.sitofp %334 : vector<8x128xi32> to vector<8x128xf32>
    %c312 = arith.constant 312 : index
    %c0_148 = arith.constant 0 : index
    %336 = vector.load %arg7[%c312, %c0_148] : memref<384x128xf32, #tpu.memory_space<vmem>>, vector<8x128xf32>
    tpu.vector_store %arg7[%c312, %c0_148], %335 {strides = array<i32>} : memref<384x128xf32, #tpu.memory_space<vmem>>, vector<8x128xf32>,
    %c40_149 = arith.constant 40 : index
    %c0_150 = arith.constant 0 : index
    %337 = vector.load %arg2[%c40_149, %c0_150] : memref<48x128xi32, #tpu.memory_space<vmem>>, vector<1x128xi32>
    %338 = vector.broadcast %337 : vector<1x128xi32> to vector<8x128xi32>
    %339 = arith.cmpi eq, %338, %0 : vector<8x128xi32>
    %340 = arith.extui %339 : vector<8x128xi1> to vector<8x128xi32>
    %341 = arith.sitofp %340 : vector<8x128xi32> to vector<8x128xf32>
    %c320 = arith.constant 320 : index
    %c0_151 = arith.constant 0 : index
    %342 = vector.load %arg7[%c320, %c0_151] : memref<384x128xf32, #tpu.memory_space<vmem>>, vector<8x128xf32>
    tpu.vector_store %arg7[%c320, %c0_151], %341 {strides = array<i32>} : memref<384x128xf32, #tpu.memory_space<vmem>>, vector<8x128xf32>,
    %c41 = arith.constant 41 : index
    %c0_152 = arith.constant 0 : index
    %343 = vector.load %arg2[%c41, %c0_152] : memref<48x128xi32, #tpu.memory_space<vmem>>, vector<1x128xi32>
    %344 = vector.broadcast %343 : vector<1x128xi32> to vector<8x128xi32>
    %345 = arith.cmpi eq, %344, %0 : vector<8x128xi32>
    %346 = arith.extui %345 : vector<8x128xi1> to vector<8x128xi32>
    %347 = arith.sitofp %346 : vector<8x128xi32> to vector<8x128xf32>
    %c328 = arith.constant 328 : index
    %c0_153 = arith.constant 0 : index
    %348 = vector.load %arg7[%c328, %c0_153] : memref<384x128xf32, #tpu.memory_space<vmem>>, vector<8x128xf32>
    tpu.vector_store %arg7[%c328, %c0_153], %347 {strides = array<i32>} : memref<384x128xf32, #tpu.memory_space<vmem>>, vector<8x128xf32>,
    %c42 = arith.constant 42 : index
    %c0_154 = arith.constant 0 : index
    %349 = vector.load %arg2[%c42, %c0_154] : memref<48x128xi32, #tpu.memory_space<vmem>>, vector<1x128xi32>
    %350 = vector.broadcast %349 : vector<1x128xi32> to vector<8x128xi32>
    %351 = arith.cmpi eq, %350, %0 : vector<8x128xi32>
    %352 = arith.extui %351 : vector<8x128xi1> to vector<8x128xi32>
    %353 = arith.sitofp %352 : vector<8x128xi32> to vector<8x128xf32>
    %c336 = arith.constant 336 : index
    %c0_155 = arith.constant 0 : index
    %354 = vector.load %arg7[%c336, %c0_155] : memref<384x128xf32, #tpu.memory_space<vmem>>, vector<8x128xf32>
    tpu.vector_store %arg7[%c336, %c0_155], %353 {strides = array<i32>} : memref<384x128xf32, #tpu.memory_space<vmem>>, vector<8x128xf32>,
    %c43 = arith.constant 43 : index
    %c0_156 = arith.constant 0 : index
    %355 = vector.load %arg2[%c43, %c0_156] : memref<48x128xi32, #tpu.memory_space<vmem>>, vector<1x128xi32>
    %356 = vector.broadcast %355 : vector<1x128xi32> to vector<8x128xi32>
    %357 = arith.cmpi eq, %356, %0 : vector<8x128xi32>
    %358 = arith.extui %357 : vector<8x128xi1> to vector<8x128xi32>
    %359 = arith.sitofp %358 : vector<8x128xi32> to vector<8x128xf32>
    %c344 = arith.constant 344 : index
    %c0_157 = arith.constant 0 : index
    %360 = vector.load %arg7[%c344, %c0_157] : memref<384x128xf32, #tpu.memory_space<vmem>>, vector<8x128xf32>
    tpu.vector_store %arg7[%c344, %c0_157], %359 {strides = array<i32>} : memref<384x128xf32, #tpu.memory_space<vmem>>, vector<8x128xf32>,
    %c44 = arith.constant 44 : index
    %c0_158 = arith.constant 0 : index
    %361 = vector.load %arg2[%c44, %c0_158] : memref<48x128xi32, #tpu.memory_space<vmem>>, vector<1x128xi32>
    %362 = vector.broadcast %361 : vector<1x128xi32> to vector<8x128xi32>
    %363 = arith.cmpi eq, %362, %0 : vector<8x128xi32>
    %364 = arith.extui %363 : vector<8x128xi1> to vector<8x128xi32>
    %365 = arith.sitofp %364 : vector<8x128xi32> to vector<8x128xf32>
    %c352 = arith.constant 352 : index
    %c0_159 = arith.constant 0 : index
    %366 = vector.load %arg7[%c352, %c0_159] : memref<384x128xf32, #tpu.memory_space<vmem>>, vector<8x128xf32>
    tpu.vector_store %arg7[%c352, %c0_159], %365 {strides = array<i32>} : memref<384x128xf32, #tpu.memory_space<vmem>>, vector<8x128xf32>,
    %c45 = arith.constant 45 : index
    %c0_160 = arith.constant 0 : index
    %367 = vector.load %arg2[%c45, %c0_160] : memref<48x128xi32, #tpu.memory_space<vmem>>, vector<1x128xi32>
    %368 = vector.broadcast %367 : vector<1x128xi32> to vector<8x128xi32>
    %369 = arith.cmpi eq, %368, %0 : vector<8x128xi32>
    %370 = arith.extui %369 : vector<8x128xi1> to vector<8x128xi32>
    %371 = arith.sitofp %370 : vector<8x128xi32> to vector<8x128xf32>
    %c360 = arith.constant 360 : index
    %c0_161 = arith.constant 0 : index
    %372 = vector.load %arg7[%c360, %c0_161] : memref<384x128xf32, #tpu.memory_space<vmem>>, vector<8x128xf32>
    tpu.vector_store %arg7[%c360, %c0_161], %371 {strides = array<i32>} : memref<384x128xf32, #tpu.memory_space<vmem>>, vector<8x128xf32>,
    %c46 = arith.constant 46 : index
    %c0_162 = arith.constant 0 : index
    %373 = vector.load %arg2[%c46, %c0_162] : memref<48x128xi32, #tpu.memory_space<vmem>>, vector<1x128xi32>
    %374 = vector.broadcast %373 : vector<1x128xi32> to vector<8x128xi32>
    %375 = arith.cmpi eq, %374, %0 : vector<8x128xi32>
    %376 = arith.extui %375 : vector<8x128xi1> to vector<8x128xi32>
    %377 = arith.sitofp %376 : vector<8x128xi32> to vector<8x128xf32>
    %c368 = arith.constant 368 : index
    %c0_163 = arith.constant 0 : index
    %378 = vector.load %arg7[%c368, %c0_163] : memref<384x128xf32, #tpu.memory_space<vmem>>, vector<8x128xf32>
    tpu.vector_store %arg7[%c368, %c0_163], %377 {strides = array<i32>} : memref<384x128xf32, #tpu.memory_space<vmem>>, vector<8x128xf32>,
    %c47 = arith.constant 47 : index
    %c0_164 = arith.constant 0 : index
    %379 = vector.load %arg2[%c47, %c0_164] : memref<48x128xi32, #tpu.memory_space<vmem>>, vector<1x128xi32>
    %380 = vector.broadcast %379 : vector<1x128xi32> to vector<8x128xi32>
    %381 = arith.cmpi eq, %380, %0 : vector<8x128xi32>
    %382 = arith.extui %381 : vector<8x128xi1> to vector<8x128xi32>
    %383 = arith.sitofp %382 : vector<8x128xi32> to vector<8x128xf32>
    %c376 = arith.constant 376 : index
    %c0_165 = arith.constant 0 : index
    %384 = vector.load %arg7[%c376, %c0_165] : memref<384x128xf32, #tpu.memory_space<vmem>>, vector<8x128xf32>
    tpu.vector_store %arg7[%c376, %c0_165], %383 {strides = array<i32>} : memref<384x128xf32, #tpu.memory_space<vmem>>, vector<8x128xf32>,
    %c0_166 = arith.constant 0 : index
    %c0_167 = arith.constant 0 : index
    %385 = vector.load %arg3[%c0_166, %c0_167] : memref<32x128xf32, #tpu.memory_space<vmem>>, vector<32x128xf32>
    %c0_168 = arith.constant 0 : index
    %c0_169 = arith.constant 0 : index
    %386 = vector.load %arg6[%c0_168, %c0_169] : memref<128x128xf32, #tpu.memory_space<vmem>>, vector<128x128xf32>
    %cst = arith.constant dense<0.000000e+00> : vector<32x128xf32>
    %387 = tpu.matmul %385, %386, %cst {dimension_numbers = #tpu.dot_dimension_numbers<[1], [0], [0], [1], [0, 0, 1, 1], [], []>} : vector<32x128xf32>, vector<128x128xf32>, vector<32x128xf32> -> vector<32x128xf32>
    %388 = vector.extract_strided_slice %387 {offsets = [0, 0], sizes = [8, 128], strides = [1, 1]} : vector<32x128xf32> to vector<8x128xf32>
    %cst_170 = arith.constant dense<0xFF800000> : vector<128xf32>
    %389 = vector.multi_reduction <maximumf>, %388, %cst_170 [0] : vector<8x128xf32> to vector<128xf32>
    %390 = vector.shape_cast %389 : vector<128xf32> to vector<1x128xf32>
    %391 = vector.broadcast %390 : vector<1x128xf32> to vector<8x128xf32>
    %392 = arith.subf %388, %391 : vector<8x128xf32>
    %393 = math.exp %392 : vector<8x128xf32>
    %cst_171 = arith.constant dense<0.000000e+00> : vector<128xf32>
    %394 = vector.multi_reduction <add>, %393, %cst_171 [0] : vector<8x128xf32> to vector<128xf32>
    %395 = vector.shape_cast %394 : vector<128xf32> to vector<1x128xf32>
    %396 = math.log %395 : vector<1x128xf32>
    %397 = arith.addf %390, %396 : vector<1x128xf32>
    %398 = vector.extract_strided_slice %387 {offsets = [8, 0], sizes = [8, 128], strides = [1, 1]} : vector<32x128xf32> to vector<8x128xf32>
    %cst_172 = arith.constant dense<0xFF800000> : vector<128xf32>
    %399 = vector.multi_reduction <maximumf>, %398, %cst_172 [0] : vector<8x128xf32> to vector<128xf32>
    %400 = vector.shape_cast %399 : vector<128xf32> to vector<1x128xf32>
    %401 = vector.broadcast %400 : vector<1x128xf32> to vector<8x128xf32>
    %402 = arith.subf %398, %401 : vector<8x128xf32>
    %403 = math.exp %402 : vector<8x128xf32>
    %cst_173 = arith.constant dense<0.000000e+00> : vector<128xf32>
    %404 = vector.multi_reduction <add>, %403, %cst_173 [0] : vector<8x128xf32> to vector<128xf32>
    %405 = vector.shape_cast %404 : vector<128xf32> to vector<1x128xf32>
    %406 = math.log %405 : vector<1x128xf32>
    %407 = arith.addf %400, %406 : vector<1x128xf32>
    %408 = vector.extract_strided_slice %387 {offsets = [16, 0], sizes = [8, 128], strides = [1, 1]} : vector<32x128xf32> to vector<8x128xf32>
    %cst_174 = arith.constant dense<0xFF800000> : vector<128xf32>
    %409 = vector.multi_reduction <maximumf>, %408, %cst_174 [0] : vector<8x128xf32> to vector<128xf32>
    %410 = vector.shape_cast %409 : vector<128xf32> to vector<1x128xf32>
    %411 = vector.broadcast %410 : vector<1x128xf32> to vector<8x128xf32>
    %412 = arith.subf %408, %411 : vector<8x128xf32>
    %413 = math.exp %412 : vector<8x128xf32>
    %cst_175 = arith.constant dense<0.000000e+00> : vector<128xf32>
    %414 = vector.multi_reduction <add>, %413, %cst_175 [0] : vector<8x128xf32> to vector<128xf32>
    %415 = vector.shape_cast %414 : vector<128xf32> to vector<1x128xf32>
    %416 = math.log %415 : vector<1x128xf32>
    %417 = arith.addf %410, %416 : vector<1x128xf32>
    %418 = vector.extract_strided_slice %387 {offsets = [24, 0], sizes = [8, 128], strides = [1, 1]} : vector<32x128xf32> to vector<8x128xf32>
    %cst_176 = arith.constant dense<0xFF800000> : vector<128xf32>
    %419 = vector.multi_reduction <maximumf>, %418, %cst_176 [0] : vector<8x128xf32> to vector<128xf32>
    %420 = vector.shape_cast %419 : vector<128xf32> to vector<1x128xf32>
    %421 = vector.broadcast %420 : vector<1x128xf32> to vector<8x128xf32>
    %422 = arith.subf %418, %421 : vector<8x128xf32>
    %423 = math.exp %422 : vector<8x128xf32>
    %cst_177 = arith.constant dense<0.000000e+00> : vector<128xf32>
    %424 = vector.multi_reduction <add>, %423, %cst_177 [0] : vector<8x128xf32> to vector<128xf32>
    %425 = vector.shape_cast %424 : vector<128xf32> to vector<1x128xf32>
    %426 = math.log %425 : vector<1x128xf32>
    %427 = arith.addf %420, %426 : vector<1x128xf32>
    %c0_178 = arith.constant 0 : index
    %c0_179 = arith.constant 0 : index
    %428 = vector.load %arg4[%c0_178, %c0_179] : memref<32x384xf32, #tpu.memory_space<vmem>>, vector<32x384xf32>
    %c0_180 = arith.constant 0 : index
    %c0_181 = arith.constant 0 : index
    %429 = vector.load %arg7[%c0_180, %c0_181] : memref<384x128xf32, #tpu.memory_space<vmem>>, vector<384x128xf32>
    %cst_182 = arith.constant dense<0.000000e+00> : vector<32x128xf32>
    %430 = tpu.matmul %428, %429, %cst_182 {dimension_numbers = #tpu.dot_dimension_numbers<[1], [0], [0], [1], [0, 0, 1, 1], [], []>} : vector<32x384xf32>, vector<384x128xf32>, vector<32x128xf32> -> vector<32x128xf32>
    %431 = vector.extract_strided_slice %430 {offsets = [0, 0], sizes = [8, 128], strides = [1, 1]} : vector<32x128xf32> to vector<8x128xf32>
    %cst_183 = arith.constant dense<0xFF800000> : vector<128xf32>
    %432 = vector.multi_reduction <maximumf>, %431, %cst_183 [0] : vector<8x128xf32> to vector<128xf32>
    %433 = vector.shape_cast %432 : vector<128xf32> to vector<1x128xf32>
    %434 = vector.broadcast %433 : vector<1x128xf32> to vector<8x128xf32>
    %435 = arith.subf %431, %434 : vector<8x128xf32>
    %436 = math.exp %435 : vector<8x128xf32>
    %cst_184 = arith.constant dense<0.000000e+00> : vector<128xf32>
    %437 = vector.multi_reduction <add>, %436, %cst_184 [0] : vector<8x128xf32> to vector<128xf32>
    %438 = vector.shape_cast %437 : vector<128xf32> to vector<1x128xf32>
    %439 = math.log %438 : vector<1x128xf32>
    %440 = arith.addf %433, %439 : vector<1x128xf32>
    %441 = vector.extract_strided_slice %430 {offsets = [8, 0], sizes = [8, 128], strides = [1, 1]} : vector<32x128xf32> to vector<8x128xf32>
    %cst_185 = arith.constant dense<0xFF800000> : vector<128xf32>
    %442 = vector.multi_reduction <maximumf>, %441, %cst_185 [0] : vector<8x128xf32> to vector<128xf32>
    %443 = vector.shape_cast %442 : vector<128xf32> to vector<1x128xf32>
    %444 = vector.broadcast %443 : vector<1x128xf32> to vector<8x128xf32>
    %445 = arith.subf %441, %444 : vector<8x128xf32>
    %446 = math.exp %445 : vector<8x128xf32>
    %cst_186 = arith.constant dense<0.000000e+00> : vector<128xf32>
    %447 = vector.multi_reduction <add>, %446, %cst_186 [0] : vector<8x128xf32> to vector<128xf32>
    %448 = vector.shape_cast %447 : vector<128xf32> to vector<1x128xf32>
    %449 = math.log %448 : vector<1x128xf32>
    %450 = arith.addf %443, %449 : vector<1x128xf32>
    %451 = vector.extract_strided_slice %430 {offsets = [16, 0], sizes = [8, 128], strides = [1, 1]} : vector<32x128xf32> to vector<8x128xf32>
    %cst_187 = arith.constant dense<0xFF800000> : vector<128xf32>
    %452 = vector.multi_reduction <maximumf>, %451, %cst_187 [0] : vector<8x128xf32> to vector<128xf32>
    %453 = vector.shape_cast %452 : vector<128xf32> to vector<1x128xf32>
    %454 = vector.broadcast %453 : vector<1x128xf32> to vector<8x128xf32>
    %455 = arith.subf %451, %454 : vector<8x128xf32>
    %456 = math.exp %455 : vector<8x128xf32>
    %cst_188 = arith.constant dense<0.000000e+00> : vector<128xf32>
    %457 = vector.multi_reduction <add>, %456, %cst_188 [0] : vector<8x128xf32> to vector<128xf32>
    %458 = vector.shape_cast %457 : vector<128xf32> to vector<1x128xf32>
    %459 = math.log %458 : vector<1x128xf32>
    %460 = arith.addf %453, %459 : vector<1x128xf32>
    %461 = vector.extract_strided_slice %430 {offsets = [24, 0], sizes = [8, 128], strides = [1, 1]} : vector<32x128xf32> to vector<8x128xf32>
    %cst_189 = arith.constant dense<0xFF800000> : vector<128xf32>
    %462 = vector.multi_reduction <maximumf>, %461, %cst_189 [0] : vector<8x128xf32> to vector<128xf32>
    %463 = vector.shape_cast %462 : vector<128xf32> to vector<1x128xf32>
    %464 = vector.broadcast %463 : vector<1x128xf32> to vector<8x128xf32>
    %465 = arith.subf %461, %464 : vector<8x128xf32>
    %466 = math.exp %465 : vector<8x128xf32>
    %cst_190 = arith.constant dense<0.000000e+00> : vector<128xf32>
    %467 = vector.multi_reduction <add>, %466, %cst_190 [0] : vector<8x128xf32> to vector<128xf32>
    %468 = vector.shape_cast %467 : vector<128xf32> to vector<1x128xf32>
    %469 = math.log %468 : vector<1x128xf32>
    %470 = arith.addf %463, %469 : vector<1x128xf32>
    %471 = arith.addf %397, %440 : vector<1x128xf32>
    %472 = arith.addf %407, %450 : vector<1x128xf32>
    %473 = arith.addf %417, %460 : vector<1x128xf32>
    %474 = arith.addf %427, %470 : vector<1x128xf32>
    %475 = arith.maximumf %471, %472 : vector<1x128xf32>
    %476 = arith.maximumf %475, %473 : vector<1x128xf32>
    %477 = arith.maximumf %476, %474 : vector<1x128xf32>
    %478 = arith.subf %471, %477 : vector<1x128xf32>
    %479 = math.exp %478 : vector<1x128xf32>
    %480 = arith.subf %472, %477 : vector<1x128xf32>
    %481 = math.exp %480 : vector<1x128xf32>
    %482 = arith.addf %479, %481 : vector<1x128xf32>
    %483 = arith.subf %473, %477 : vector<1x128xf32>
    %484 = math.exp %483 : vector<1x128xf32>
    %485 = arith.addf %482, %484 : vector<1x128xf32>
    %486 = arith.subf %474, %477 : vector<1x128xf32>
    %487 = math.exp %486 : vector<1x128xf32>
    %488 = arith.addf %485, %487 : vector<1x128xf32>
    %489 = math.log %488 : vector<1x128xf32>
    %490 = arith.addf %477, %489 : vector<1x128xf32>
    %c0_191 = arith.constant 0 : index
    %c0_192 = arith.constant 0 : index
    %491 = vector.load %arg5[%c0_191, %c0_192] : memref<1x128xf32, #tpu.memory_space<vmem>>, vector<1x128xf32>
    tpu.vector_store %arg5[%c0_191, %c0_192], %490 {strides = array<i32>} : memref<1x128xf32, #tpu.memory_space<vmem>>, vector<1x128xf32>,
    return
  }
  func.func @transform_0(%arg0: i32) -> (i32, i32) {
    %c0_i32 = arith.constant 0 : i32
    %c0_i32_0 = arith.constant 0 : i32
    return %c0_i32, %arg0 : i32, i32
  }
  func.func @transform_1(%arg0: i32) -> (i32, i32) {
    %c0_i32 = arith.constant 0 : i32
    %c0_i32_0 = arith.constant 0 : i32
    return %c0_i32, %arg0 : i32, i32
  }
  func.func @transform_2(%arg0: i32) -> (i32, i32) {
    %c0_i32 = arith.constant 0 : i32
    %c0_i32_0 = arith.constant 0 : i32
    %c0_i32_1 = arith.constant 0 : i32
    return %c0_i32, %c0_i32_0 : i32, i32
  }
  func.func @transform_3(%arg0: i32) -> (i32, i32) {
    %c0_i32 = arith.constant 0 : i32
    %c0_i32_0 = arith.constant 0 : i32
    %c0_i32_1 = arith.constant 0 : i32
    return %c0_i32, %c0_i32_0 : i32, i32
  }
  func.func @transform_4(%arg0: i32) -> (i32, i32) {
    %c0_i32 = arith.constant 0 : i32
    %c0_i32_0 = arith.constant 0 : i32
    return %c0_i32, %arg0 : i32, i32
  }
}

</mosaic_0001>

<bundles_post_ra>
// kernel: tpu_custom_call.1
= control target key start
LH: loop header
LB: loop body
LE: loop exit
PB: predicated region body
PF: predicated region fallthrough
CT: control target
= control target key end

     0   :  { %9 = vsyncpa [#allocation5], 0  ;;  %s2263_s0 = inlined_call_operand.hbm [shape: s32[16,128], index: 0, kind: input, shape index: {}]   ;;  %s2264_s1 = inlined_call_operand.hbm [shape: s32[48,128], index: 1, kind: input, shape index: {}]   ;;  %s2265_s2 = inlined_call_operand.hbm [shape: f32[32,128], index: 2, kind: input, shape index: {}]   ;;  %s2266_s3 = inlined_call_operand.hbm [shape: f32[32,384], index: 3, kind: input, shape index: {}]   ;;  %s2267_s4 = inlined_call_operand.hbm [shape: f32[1,128], index: 4, kind: output, shape index: {}]  }
   0x1   :  { %10 = vsyncpa [#allocation8], 0 }
   0x2   :  { %11 = vsyncpa [#allocation11], 0 }
   0x3   :  { %12 = vsyncpa [#allocation6], 0  ;;  %s1807_s15 = smov [#allocation7]   ;;  %s1808_s17 = smov [#allocation4]  }
   0x4   :  { %s30_s16 = sshll.u32 %s1807_s15, 4  ;;  %s18_s18 = sshll.u32 %s1808_s17, 4  ;;  %s31_s16 = int_to_ptr.vmem [resolvable:$true] %s30_s16  ;;  %s1842_s18 = int_to_ptr.vmem [resolvable:$true] %s18_s18 }
   0x5   :  { %s1689_s21 = scalar_lea.hbm %s2264_s1, 768 }
   0x6   :  { %p1690_p0 = scmp.ne.s32.totalorder %s2264_s1, %s1689_s21  ;;  %p1693_p1 = scmp.lt.u32.totalorder %s1689_s21, %s2264_s1 }
   0x8   :  { %p1695_p2 = pnand %p1693_p1, %p1690_p0 }
   0xa   :  { %1698 = shalt.err (!%p1695_p2)
}
   0xb   :  { %s1699_s26 = scalar_lea.vmem %s31_s16, 768  ;;  %p1704_p4 = scmp.lt.s32.totalorder %s31_s16, %s31_s16 }
   0xc   :  { %p1700_p3 = scmp.ne.s32.totalorder %s31_s16, %s1699_s26  ;;  %p1705_p5 = scmp.lt.s32.totalorder %s1699_s26, %s1699_s26 }
   0xe   :  { %p1706_p6 = por %p1705_p5, %p1704_p4 }
  0x10   :  { %p1707_p7 = pnand %p1706_p6, %p1700_p3 }
  0x12   :  { %1710 = shalt.err (!%p1707_p7)
}
  0x13   :  { %s1809_s27 = smov 128   ;;  %s1810_s28 = smov 8  }
  0x14   :  { %36 = dma.hbm_to_vmem [thread:$0]  %s2264_s1, 768, %s31_s16, [#allocation8], %s1809_s27, %s1809_s27, %s1810_s28  }
  0x15   :  { %s1711_s7 = scalar_lea.hbm %s2263_s0, 256 }
  0x16   :  { %p1712_p8 = scmp.ne.s32.totalorder %s2263_s0, %s1711_s7  ;;  %p1715_p9 = scmp.lt.u32.totalorder %s1711_s7, %s2263_s0 }
  0x18   :  { %p1717_p10 = pnand %p1715_p9, %p1712_p8 }
  0x1a   :  { %1720 = shalt.err (!%p1717_p10)
}
  0x1b   :  { %s1721_s12 = scalar_lea.vmem %s1842_s18, 256  ;;  %p1726_p12 = scmp.lt.s32.totalorder %s1842_s18, %s1842_s18 }
  0x1c   :  { %p1722_p11 = scmp.ne.s32.totalorder %s1842_s18, %s1721_s12  ;;  %p1727_p13 = scmp.lt.s32.totalorder %s1721_s12, %s1721_s12 }
  0x1e   :  { %p1728_p0 = por %p1727_p13, %p1726_p12 }
  0x20   :  { %p1729_p1 = pnand %p1728_p0, %p1722_p11 }
  0x22   :  { %1732 = shalt.err (!%p1729_p1)
}
  0x23   :  { %24 = dma.hbm_to_vmem [thread:$0]  %s2263_s0, 256, %s1842_s18, [#allocation5], %s1809_s27, %s1809_s27, %s1810_s28  }
  0x24   :  { %s1811_s14 = smov [#allocation9]   ;;  %s1812_s16 = smov [#allocation10]  }
  0x25   :  { %s42_s15 = sshll.u32 %s1811_s14, 4  ;;  %s54_s17 = sshll.u32 %s1812_s16, 4  ;;  %s43_s15 = int_to_ptr.vmem [resolvable:$true] %s42_s15  ;;  %s1879_s17 = int_to_ptr.vmem [resolvable:$true] %s54_s17 }
  0x26   :  { %s1733_s21 = scalar_lea.hbm %s2265_s2, 512 }
  0x27   :  { %p1734_p2 = scmp.ne.s32.totalorder %s2265_s2, %s1733_s21  ;;  %p1737_p3 = scmp.lt.u32.totalorder %s1733_s21, %s2265_s2 }
  0x29   :  { %p1739_p4 = pnand %p1737_p3, %p1734_p2 }
  0x2b   :  { %1742 = shalt.err (!%p1739_p4)
}
  0x2c   :  { %s1743_s0 = scalar_lea.vmem %s43_s15, 512  ;;  %p1748_p6 = scmp.lt.s32.totalorder %s43_s15, %s43_s15 }
  0x2d   :  { %p1744_p5 = scmp.ne.s32.totalorder %s43_s15, %s1743_s0  ;;  %p1749_p7 = scmp.lt.s32.totalorder %s1743_s0, %s1743_s0 }
  0x2f   :  { %p1750_p8 = por %p1749_p7, %p1748_p6 }
  0x31   :  { %p1751_p9 = pnand %p1750_p8, %p1744_p5 }
  0x33   :  { %1754 = shalt.err (!%p1751_p9)
}
  0x34   :  { %48 = dma.hbm_to_vmem [thread:$0]  %s2265_s2, 512, %s43_s15, [#allocation8], %s1809_s27, %s1809_s27, %s1810_s28  }
  0x35   :  { %s1755_s5 = scalar_lea.hbm %s2266_s3, 1536 }
  0x36   :  { %p1756_p10 = scmp.ne.s32.totalorder %s2266_s3, %s1755_s5  ;;  %p1759_p11 = scmp.lt.u32.totalorder %s1755_s5, %s2266_s3 }
  0x38   :  { %p1761_p12 = pnand %p1759_p11, %p1756_p10 }
  0x3a   :  { %1764 = shalt.err (!%p1761_p12)
}
  0x3b   :  { %s1765_s10 = scalar_lea.vmem %s1879_s17, 1536  ;;  %p1770_p0 = scmp.lt.s32.totalorder %s1879_s17, %s1879_s17 }
  0x3c   :  { %p1766_p13 = scmp.ne.s32.totalorder %s1879_s17, %s1765_s10  ;;  %p1771_p1 = scmp.lt.s32.totalorder %s1765_s10, %s1765_s10 }
  0x3e   :  { %p1772_p2 = por %p1771_p1, %p1770_p0 }
  0x40   :  { %p1773_p3 = pnand %p1772_p2, %p1766_p13 }
  0x42   :  { %1776 = shalt.err (!%p1773_p3)
}
  0x43   :  { %s1813_s2 = smov 384   ;;  %s1814_s27 = smov 24  }
  0x44   :  { %60 = dma.hbm_to_vmem [thread:$0]  %s2266_s3, 1536, %s1879_s17, [#allocation11], %s1813_s2, %s1813_s2, %s1814_s27  }
  0x45   :  { %1799 = dma.done.wait [#allocation5], 256  }
  0x46   :  { %1800 = vsyncadd [#allocation5], 4294967040 }
  0x47   :  { %1801 = dma.done.wait [#allocation8], 1280  }
  0x48   :  { %1802 = vsyncadd [#allocation8], 4294966016 }
  0x49   :  { %1803 = dma.done.wait [#allocation11], 1536  }
  0x4a   :  { %1804 = vsyncadd [#allocation11], 4294965760  ;;  %v73_v0 = vlaneseq  ;;  %v1173_v2 = vld [vmem:[#allocation4] ss:$0 sm:$0xff]  ;;  %v1175_v3 = vld [vmem:[#allocation4 + $0x1] ss:$0 sm:$0xff] }
  0x4b   :  { %v1237_v4 = vld [vmem:[#allocation7 + $0x10] ss:$0 sm:$0xff]  ;;  %v1239_v5 = vld [vmem:[#allocation7 + $0x11] ss:$0 sm:$0xff]  ;;  %v1205_v6 = vld [vmem:[#allocation7] ss:$0 sm:$0xff] }
  0x4c   :  { %v1913_v1 = vshrl.u32 %v73_v0, 7  ;;  %v1207_v7 = vld [vmem:[#allocation7 + $0x1] ss:$0 sm:$0xff]  ;;  %v1177_v8 = vld [vmem:[#allocation4 + $0x2] ss:$0 sm:$0xff]  ;;  %v829_v0 = vld [vmem:[#allocation10 + $0x8] sm:$0xff] }
  0x4d   :  { %v1179_v9 = vld [vmem:[#allocation4 + $0x3] ss:$0 sm:$0xff]  ;;  %v1815_v10 = vmov 1.0|1.0   ;;  %v1241_v11 = vld [vmem:[#allocation7 + $0x12] ss:$0 sm:$0xff]  ;;  %952 = vmatprep.mubr.f32.mxu1 %v829_v0 }
  0x4e   :  { %vm80_vm0 = vcmp.eq.s32.totalorder %v1173_v2, %v1913_v1  ;;  %vm89_vm1 = vcmp.eq.s32.totalorder %v1175_v3, %v1913_v1  ;;  %vm368_vm2 = vcmp.eq.s32.totalorder %v1237_v4, %v1913_v1  ;;  %vm377_vm4 = vcmp.eq.s32.totalorder %v1239_v5, %v1913_v1  ;;  %v1243_v12 = vld [vmem:[#allocation7 + $0x13] ss:$0 sm:$0xff]  ;;  %v1209_v13 = vld [vmem:[#allocation7 + $0x2] ss:$0 sm:$0xff]  ;;  %v1211_v14 = vld [vmem:[#allocation7 + $0x3] ss:$0 sm:$0xff] }
  0x4f   :  { %vm1525_vm3 = vmpackc.low %vm89_vm1, %vm80_vm0  ;;  %vm224_vm5 = vcmp.eq.s32.totalorder %v1205_v6, %v1913_v1  ;;  %vm233_vm6 = vcmp.eq.s32.totalorder %v1207_v7, %v1913_v1  ;;  %vm98_vm8 = vcmp.eq.s32.totalorder %v1177_v8, %v1913_v1  ;;  %vm107_vm9 = vcmp.eq.s32.totalorder %v1179_v9, %v1913_v1  ;;  %v1181_v16 = vld [vmem:[#allocation4 + $0x4] ss:$0 sm:$0xff]  ;;  %v1183_v17 = vld [vmem:[#allocation4 + $0x5] ss:$0 sm:$0xff]  ;;  %s1816_s3 = smov [#allocation12]  }
  0x50   :  { %1526 = vmatprep.subr.msk.bf16.mxu0 %vm1525_vm3, %v1815_v10  ;;  %vm1557_vm7 = vmpackc.low %vm377_vm4, %vm368_vm2  ;;  %vm386_vm11 = vcmp.eq.s32.totalorder %v1241_v11, %v1913_v1  ;;  %vm395_vm12 = vcmp.eq.s32.totalorder %v1243_v12, %v1913_v1  ;;  %vm242_vm14 = vcmp.eq.s32.totalorder %v1209_v13, %v1913_v1  ;;  %vm251_vm15 = vcmp.eq.s32.totalorder %v1211_v14, %v1913_v1  ;;  %v1245_v18 = vld [vmem:[#allocation7 + $0x14] ss:$0 sm:$0xff]  ;;  %v1247_v19 = vld [vmem:[#allocation7 + $0x15] ss:$0 sm:$0xff]  ;;  %s1162_s12 = sshll.u32 %s1816_s3, 4  ;;  %s1163_s12 = int_to_ptr.vmem [resolvable:$true] %s1162_s12 }
  0x51   :  { %1558 = vmatprep.subr.msk.bf16.mxu1 %vm1557_vm7, %v1815_v10  ;;  %1528 = vmatpush3.bf16.msk.msra.mxu0 %vm1525_vm3, %v1815_v10  ;;  %vm1559_vm10 = vmpackc.low %vm233_vm6, %vm224_vm5  ;;  %vm116_vm1 = vcmp.eq.s32.totalorder %v1181_v16, %v1913_v1  ;;  %vm125_vm2 = vcmp.eq.s32.totalorder %v1183_v17, %v1913_v1  ;;  %vm404_vm4 = vcmp.eq.s32.totalorder %v1245_v18, %v1913_v1  ;;  %v1213_v20 = vld [vmem:[#allocation7 + $0x4] ss:$0 sm:$0xff]  ;;  %v1215_v21 = vld [vmem:[#allocation7 + $0x5] ss:$0 sm:$0xff]  ;;  %s1777_s1 = scalar_lea.vmem %s1163_s12, 16  ;;  %s1781_s13 = scalar_lea.vmem %s1163_s12, 32 }
  0x52   :  { %1560 = vmatpush3.bf16.msk.msra.mxu1 %vm1559_vm10, %v1815_v10  ;;  %vm1929_vm13 = vmpackc.low %vm107_vm9, %vm98_vm8  ;;  %vm413_vm5 = vcmp.eq.s32.totalorder %v1247_v19, %v1913_v1  ;;  %vm260_vm7 = vcmp.eq.s32.totalorder %v1213_v20, %v1913_v1  ;;  %vm269_vm8 = vcmp.eq.s32.totalorder %v1215_v21, %v1913_v1  ;;  %v1185_v23 = vld [vmem:[#allocation4 + $0x6] ss:$0 sm:$0xff]  ;;  %v1187_v24 = vld [vmem:[#allocation4 + $0x7] ss:$0 sm:$0xff]  ;;  %p1778_p4 = scmp.ne.s32.totalorder %s1163_s12, %s1777_s1  ;;  %p1782_p5 = scmp.lt.s32.totalorder %s1163_s12, %s1163_s12 }
  0x53   :  { %1530 = vmatprep.subr.msk.bf16.mxu0 %vm1929_vm13, %v1815_v10  ;;  %vm1561_vm0 = vmpackc.low %vm395_vm12, %vm386_vm11  ;;  %vm134_vm10 = vcmp.eq.s32.totalorder %v1185_v23, %v1913_v1  ;;  %vm143_vm11 = vcmp.eq.s32.totalorder %v1187_v24, %v1913_v1  ;;  %v1249_v25 = vld [vmem:[#allocation7 + $0x16] ss:$0 sm:$0xff]  ;;  %v1251_v26 = vld [vmem:[#allocation7 + $0x17] ss:$0 sm:$0xff]  ;;  %p1783_p6 = scmp.lt.s32.totalorder %s1781_s13, %s1777_s1 }
  0x54   :  { %1562 = vmatprep.subr.msk.bf16.mxu1 %vm1561_vm0, %v1815_v10  ;;  %vm1563_vm3 = vmpackc.low %vm251_vm15, %vm242_vm14  ;;  %vm431_vm14 = vcmp.eq.s32.totalorder %v1251_v26, %v1913_v1  ;;  %v1217_v28 = vld [vmem:[#allocation7 + $0x6] ss:$0 sm:$0xff]  ;;  %v1219_v29 = vld [vmem:[#allocation7 + $0x7] ss:$0 sm:$0xff] }
  0x55   :  { %1532 = vmatpush3.bf16.msk.msra.mxu0 %vm1929_vm13, %v1815_v10  ;;  %vm1946_vm6 = vmpackc.low %vm125_vm2, %vm116_vm1  ;;  %vm422_vm13 = vcmp.eq.s32.totalorder %v1249_v25, %v1913_v1  ;;  %vm278_vm0 = vcmp.eq.s32.totalorder %v1217_v28, %v1913_v1  ;;  %vm287_vm1 = vcmp.eq.s32.totalorder %v1219_v29, %v1913_v1  ;;  %v1189_v31 = vld [vmem:[#allocation4 + $0x8] ss:$0 sm:$0xff]  ;;  %v1191_v32 = vld [vmem:[#allocation4 + $0x9] ss:$0 sm:$0xff]  ;;  %p1784_p7 = por %p1783_p6, %p1782_p5 }
  0x56   :  { %1564 = vmatpush3.bf16.msk.msra.mxu1 %vm1563_vm3, %v1815_v10  ;;  %1534 = vmatprep.subr.msk.bf16.mxu0 %vm1946_vm6, %v1815_v10  ;;  %vm1565_vm9 = vmpackc.low %vm413_vm5, %vm404_vm4  ;;  %vm152_vm3 = vcmp.eq.s32.totalorder %v1189_v31, %v1913_v1  ;;  %vm161_vm4 = vcmp.eq.s32.totalorder %v1191_v32, %v1913_v1  ;;  %v1253_v33 = vld [vmem:[#allocation7 + $0x18] ss:$0 sm:$0xff]  ;;  %v1255_v34 = vld [vmem:[#allocation7 + $0x19] ss:$0 sm:$0xff] }
  0x57   :  { %1566 = vmatprep.subr.msk.bf16.mxu1 %vm1565_vm9, %v1815_v10  ;;  %vm1959_vm12 = vmpackc.low %vm269_vm8, %vm260_vm7  ;;  %vm449_vm7 = vcmp.eq.s32.totalorder %v1255_v34, %v1913_v1  ;;  %v1221_v36 = vld [vmem:[#allocation7 + $0x8] ss:$0 sm:$0xff]  ;;  %v1223_v37 = vld [vmem:[#allocation7 + $0x9] ss:$0 sm:$0xff]  ;;  %p1785_p8 = pnand %p1784_p7, %p1778_p4 }
  0x58   :  { %vm1965_vm15 = vmpackc.low %vm143_vm11, %vm134_vm10  ;;  %vm296_vm9 = vcmp.eq.s32.totalorder %v1221_v36, %v1913_v1  ;;  %vm305_vm10 = vcmp.eq.s32.totalorder %v1223_v37, %v1913_v1  ;;  %v1193_v39 = vld [vmem:[#allocation4 + $0xa] ss:$0 sm:$0xff]  ;;  %v1195_v40 = vld [vmem:[#allocation4 + $0xb] ss:$0 sm:$0xff] }
  0x59   :  { %1536 = vmatpush3.bf16.msk.msra.mxu0 %vm1946_vm6, %v1815_v10  ;;  %vm1569_vm2 = vmpackc.low %vm431_vm14, %vm422_vm13  ;;  %vm440_vm6 = vcmp.eq.s32.totalorder %v1253_v33, %v1913_v1  ;;  %vm179_vm13 = vcmp.eq.s32.totalorder %v1195_v40, %v1913_v1  ;;  %v1257_v42 = vld [vmem:[#allocation7 + $0x1a] ss:$0 sm:$0xff]  ;;  %v1259_v43 = vld [vmem:[#allocation7 + $0x1b] ss:$0 sm:$0xff] }
  0x5a   :  { %1568 = vmatpush3.bf16.msk.msra.mxu1 %vm1959_vm12, %v1815_v10  ;;  %1538 = vmatprep.subr.msk.bf16.mxu0 %vm1965_vm15, %v1815_v10  ;;  %vm1982_vm5 = vmpackc.low %vm287_vm1, %vm278_vm0  ;;  %vm170_vm12 = vcmp.eq.s32.totalorder %v1193_v39, %v1913_v1  ;;  %vm458_vm14 = vcmp.eq.s32.totalorder %v1257_v42, %v1913_v1  ;;  %vm467_vm0 = vcmp.eq.s32.totalorder %v1259_v43, %v1913_v1  ;;  %v1225_v44 = vld [vmem:[#allocation7 + $0xa] ss:$0 sm:$0xff]  ;;  %v1227_v45 = vld [vmem:[#allocation7 + $0xb] ss:$0 sm:$0xff] }
  0x5b   :  { %1570 = vmatprep.subr.msk.bf16.mxu1 %vm1569_vm2, %v1815_v10  ;;  %vm1989_vm8 = vmpackc.low %vm161_vm4, %vm152_vm3  ;;  %vm323_vm2 = vcmp.eq.s32.totalorder %v1227_v45, %v1913_v1  ;;  %v1197_v47 = vld [vmem:[#allocation4 + $0xc] ss:$0 sm:$0xff]  ;;  %v1199_v48 = vld [vmem:[#allocation4 + $0xd] ss:$0 sm:$0xff] }
  0x5c   :  { %vm1995_vm11 = vmpackc.low %vm449_vm7, %vm440_vm6  ;;  %vm188_vm4 = vcmp.eq.s32.totalorder %v1197_v47, %v1913_v1  ;;  %v1261_v50 = vld [vmem:[#allocation7 + $0x1c] ss:$0 sm:$0xff]  ;;  %v1263_v51 = vld [vmem:[#allocation7 + $0x1d] ss:$0 sm:$0xff] }
  0x5d   :  { %1540 = vmatpush3.bf16.msk.msra.mxu0 %vm1965_vm15, %v1815_v10  ;;  %vm2016_vm1 = vmpackc.low %vm305_vm10, %vm296_vm9  ;;  %vm314_vm15 = vcmp.eq.s32.totalorder %v1225_v44, %v1913_v1  ;;  %vm476_vm7 = vcmp.eq.s32.totalorder %v1261_v50, %v1913_v1  ;;  %vm485_vm9 = vcmp.eq.s32.totalorder %v1263_v51, %v1913_v1  ;;  %v1229_v52 = vld [vmem:[#allocation7 + $0xc] ss:$0 sm:$0xff]  ;;  %v1231_v53 = vld [vmem:[#allocation7 + $0xd] ss:$0 sm:$0xff] }
  0x5e   :  { %1572 = vmatpush3.bf16.msk.msra.mxu1 %vm1982_vm5, %v1815_v10  ;;  %1542 = vmatprep.subr.msk.bf16.mxu0 %vm1989_vm8, %v1815_v10  ;;  %vm2029_vm3 = vmpackc.low %vm179_vm13, %vm170_vm12  ;;  %vm197_vm5 = vcmp.eq.s32.totalorder %v1199_v48, %v1913_v1  ;;  %v1201_v55 = vld [vmem:[#allocation4 + $0xe] ss:$0 sm:$0xff]  ;;  %v1203_v56 = vld [vmem:[#allocation4 + $0xf] ss:$0 sm:$0xff]  ;;  %vm332_vm12 = vcmp.eq.s32.totalorder %v1229_v52, %v1913_v1  ;;  %vm341_vm13 = vcmp.eq.s32.totalorder %v1231_v53, %v1913_v1 }
  0x5f   :  { %1574 = vmatprep.subr.msk.bf16.mxu1 %vm1995_vm11, %v1815_v10  ;;  %vm1577_vm6 = vmpackc.low %vm467_vm0, %vm458_vm14  ;;  %v1265_v58 = vld [vmem:[#allocation7 + $0x1e] ss:$0 sm:$0xff]  ;;  %v1267_v59 = vld [vmem:[#allocation7 + $0x1f] ss:$0 sm:$0xff]  ;;  %vm206_vm14 = vcmp.eq.s32.totalorder %v1201_v55, %v1913_v1  ;;  %vm215_vm0 = vcmp.eq.s32.totalorder %v1203_v56, %v1913_v1 }
  0x60   :  { %vm2048_vm10 = vmpackc.low %vm323_vm2, %vm314_vm15  ;;  %v1233_v61 = vld [vmem:[#allocation7 + $0xe] ss:$0 sm:$0xff]  ;;  %v1235_v62 = vld [vmem:[#allocation7 + $0xf] ss:$0 sm:$0xff]  ;;  %vm503_vm15 = vcmp.eq.s32.totalorder %v1267_v59, %v1913_v1 }
  0x61   :  { %1544 = vmatpush3.bf16.msk.msra.mxu0 %vm1989_vm8, %v1815_v10  ;;  %vm2060_vm8 = vmpackc.low %vm197_vm5, %vm188_vm4  ;;  %v651_v63 = vld [vmem:[#allocation9] sm:$0xff]  ;;  %v1269_v2 = vld [vmem:[#allocation7 + $0x20] ss:$0 sm:$0xff]  ;;  %vm350_vm4 = vcmp.eq.s32.totalorder %v1233_v61, %v1913_v1  ;;  %vm359_vm5 = vcmp.eq.s32.totalorder %v1235_v62, %v1913_v1 }
  0x62   :  { %1576 = vmatpush3.bf16.msk.msra.mxu1 %vm2016_vm1, %v1815_v10  ;;  %1546 = vmatprep.subr.msk.bf16.mxu0 %vm2029_vm3, %v1815_v10  ;;  %vm2065_vm11 = vmpackc.low %vm485_vm9, %vm476_vm7  ;;  %vm494_vm1 = vcmp.eq.s32.totalorder %v1265_v58, %v1913_v1  ;;  %v1271_v3 = vld [vmem:[#allocation7 + $0x21] ss:$0 sm:$0xff]  ;;  %vm512_vm7 = vcmp.eq.s32.totalorder %v1269_v2, %v1913_v1  ;;  %v1273_v5 = vld [vmem:[#allocation7 + $0x22] ss:$0 sm:$0xff] }
  0x63   :  { %1578 = vmatprep.subr.msk.bf16.mxu1 %vm1577_vm6, %v1815_v10  ;;  %1481 = vmatprep.mubr.f32.mxu0 %v651_v63  ;;  %vm1583_vm2 = vmpackc.low %vm341_vm13, %vm332_vm12  ;;  %vm521_vm9 = vcmp.eq.s32.totalorder %v1271_v3, %v1913_v1  ;;  %v1275_v6 = vld [vmem:[#allocation7 + $0x23] ss:$0 sm:$0xff]  ;;  %v652_v8 = vld [vmem:[#allocation9 + $0x8] sm:$0xff] }
  0x64   :  { %vm1585_vm6 = vmpackc.low %vm503_vm15, %vm494_vm1  ;;  %vm539_vm12 = vcmp.eq.s32.totalorder %v1275_v6, %v1913_v1  ;;  %v1277_v9 = vld [vmem:[#allocation7 + $0x24] ss:$0 sm:$0xff]  ;;  %v1279_v11 = vld [vmem:[#allocation7 + $0x25] ss:$0 sm:$0xff] }
  0x65   :  { %1548 = vmatpush3.bf16.msk.msra.mxu0 %vm2029_vm3, %v1815_v10  ;;  %vm2093_vm3 = vmpackc.low %vm215_vm0, %vm206_vm14  ;;  %v828_v12 = vld [vmem:[#allocation10] sm:$0xff]  ;;  %v653_v13 = vld [vmem:[#allocation9 + $0x10] sm:$0xff]  ;;  %vm548_vm14 = vcmp.eq.s32.totalorder %v1277_v9, %v1913_v1  ;;  %vm557_vm0 = vcmp.eq.s32.totalorder %v1279_v11, %v1913_v1 }
  0x66   :  { %1580 = vmatpush3.bf16.msk.msra.mxu1 %vm2048_vm10, %v1815_v10  ;;  %1550 = vmatprep.subr.msk.bf16.mxu0 %vm2060_vm8, %v1815_v10  ;;  %vm1587_vm10 = vmpackc.low %vm359_vm5, %vm350_vm4  ;;  %v654_v14 = vld [vmem:[#allocation9 + $0x18] sm:$0xff]  ;;  %v1281_v16 = vld [vmem:[#allocation7 + $0x26] ss:$0 sm:$0xff] }
  0x67   :  { %1582 = vmatprep.subr.msk.bf16.mxu1 %vm2065_vm11, %v1815_v10  ;;  %vm2109_vm11 = vmpackc.low %vm521_vm9, %vm512_vm7  ;;  %v1283_v17 = vld [vmem:[#allocation7 + $0x27] ss:$0 sm:$0xff]  ;;  %v832_v18 = vld [vmem:[#allocation10 + $0x20] sm:$0xff]  ;;  %vm566_vm15 = vcmp.eq.s32.totalorder %v1281_v16, %v1913_v1 }
  0x68   :  { %v831_v19 = vld [vmem:[#allocation10 + $0x18] sm:$0xff]  ;;  %vm2143_vm1 = vmpackc.low %vm557_vm0, %vm548_vm14  ;;  %v830_v24 = vld [vmem:[#allocation10 + $0x10] sm:$0xff] }
  0x69   :  { %1552 = vmatpush3.bf16.msk.msra.mxu0 %vm2060_vm8, %v1815_v10  ;;  %vm530_vm8 = vcmp.eq.s32.totalorder %v1273_v5, %v1913_v1  ;;  %v835_v21 = vld [vmem:[#allocation10 + $0x38] sm:$0xff]  ;;  %v834_v25 = vld [vmem:[#allocation10 + $0x30] sm:$0xff]  ;;  %v837_v30 = vld [vmem:[#allocation10 + $0x48] sm:$0xff] }
  0x6a   :  { %1584 = vmatpush3.bf16.msk.msra.mxu1 %vm1583_vm2, %v1815_v10  ;;  %1554 = vmatprep.subr.msk.bf16.mxu0 %vm2093_vm3, %v1815_v10  ;;  %vm2125_vm13 = vmpackc.low %vm539_vm12, %vm530_vm8  ;;  %vm575_vm2 = vcmp.eq.s32.totalorder %v1283_v17, %v1913_v1  ;;  %v1285_v22 = vld [vmem:[#allocation7 + $0x28] ss:$0 sm:$0xff]  ;;  %v1287_v23 = vld [vmem:[#allocation7 + $0x29] ss:$0 sm:$0xff] }
  0x6b   :  { %1586 = vmatprep.subr.msk.bf16.mxu1 %vm1585_vm6, %v1815_v10  ;;  %vm584_vm4 = vcmp.eq.s32.totalorder %v1285_v22, %v1913_v1  ;;  %vm593_vm5 = vcmp.eq.s32.totalorder %v1287_v23, %v1913_v1  ;;  %v838_v27 = vld [vmem:[#allocation10 + $0x50] sm:$0xff]  ;;  %v1289_v28 = vld [vmem:[#allocation7 + $0x2a] ss:$0 sm:$0xff]  ;;  %v1291_v29 = vld [vmem:[#allocation7 + $0x2b] ss:$0 sm:$0xff] }
  0x6c   :  { %vm2179_vm6 = vmpackc.low %vm593_vm5, %vm584_vm4  ;;  %vm602_vm7 = vcmp.eq.s32.totalorder %v1289_v28, %v1913_v1  ;;  %vm611_vm9 = vcmp.eq.s32.totalorder %v1291_v29, %v1913_v1  ;;  %v836_v32 = vld [vmem:[#allocation10 + $0x40] sm:$0xff]  ;;  %v1293_v33 = vld [vmem:[#allocation7 + $0x2c] ss:$0 sm:$0xff] }
  0x6d   :  { %1556 = vmatpush3.bf16.msk.msra.mxu0 %vm2093_vm3, %v1815_v10  ;;  %vm2161_vm3 = vmpackc.low %vm575_vm2, %vm566_vm15  ;;  %v1295_v34 = vld [vmem:[#allocation7 + $0x2d] ss:$0 sm:$0xff]  ;;  %v1297_v35 = vld [vmem:[#allocation7 + $0x2e] ss:$0 sm:$0xff] }
  0x6e   :  { %1588 = vmatpush3.bf16.msk.msra.mxu1 %vm1587_vm10, %v1815_v10  ;;  %1590 = vmatprep.subr.msk.bf16.mxu0 %vm2109_vm11, %v1815_v10  ;;  %vm1609_vm10 = vmpackc.low %vm611_vm9, %vm602_vm7  ;;  %vm629_vm8 = vcmp.eq.s32.totalorder %v1295_v34, %v1913_v1  ;;  %v1299_v36 = vld [vmem:[#allocation7 + $0x2f] ss:$0 sm:$0xff] }
  0x6f   :  { %1621 = vmatprep.subr.msk.bf16.mxu1 %vm2109_vm11, %v1815_v10  ;;  %vm647_vm14 = vcmp.eq.s32.totalorder %v1299_v36, %v1913_v1  ;;  %v839_v37 = vld [vmem:[#allocation10 + $0x58] sm:$0xff] }
  0x70   :  { %1482 = vmatmul.mubr.f32.vlgmr.msra.gmra.mrb[0].mxu0 %v652_v8 }
  0x71   :  { %953 = vmatmul.mubr.f32.vlgmr.msra.gmra.mrb[0].mxu1 %v828_v12  ;;  %1592 = vmatpush3.bf16.msk.msra.mxu0 %vm2109_vm11, %v1815_v10 }
  0x72   :  { %1629 = vmatpush3.bf16.msk.msra.mxu1 %vm2109_vm11, %v1815_v10  ;;  %1484 = vmatprep.mubr.f32.mxu0 %v653_v13  ;;  %vm620_vm11 = vcmp.eq.s32.totalorder %v1293_v33, %v1913_v1 }
  0x73   :  { %1594 = vmatprep.subr.msk.bf16.mxu0 %vm2125_vm13, %v1815_v10  ;;  %1622 = vmatprep.subr.msk.bf16.mxu1 %vm2125_vm13, %v1815_v10  ;;  %vm1613_vm12 = vmpackc.low %vm629_vm8, %vm620_vm11 }
  0x74   :  { %1485 = vmatmul.mubr.f32.gmra.mrb[2].mxu0 %v654_v14  ;;  %957 = vmatprep.mubr.f32.mxu1 %v832_v18 }
  0x75   :  { %1596 = vmatpush3.bf16.msk.msra.mxu0 %vm2125_vm13, %v1815_v10  ;;  %958 = vmatmul.mubr.f32.gmra.mrb[2].mxu1 %v831_v19 }
  0x76   :  { %1630 = vmatpush3.bf16.msk.msra.mxu1 %vm2125_vm13, %v1815_v10  ;;  %1598 = vmatprep.subr.msk.bf16.mxu0 %vm2143_vm1, %v1815_v10  ;;  %vm638_vm13 = vcmp.eq.s32.totalorder %v1297_v35, %v1913_v1  ;;  %v833_v1 = vld [vmem:[#allocation10 + $0x28] sm:$0xff] }
  0x77   :  { %1623 = vmatprep.subr.msk.bf16.mxu1 %vm2143_vm1, %v1815_v10  ;;  %962 = vmatprep.mubr.f32.mxu1 %v835_v21  ;;  %vm1617_vm0 = vmpackc.low %vm647_vm14, %vm638_vm13 }
  0x78   :  { %1519 = vmatprep.mubr.f32.mxu0 %v830_v24 }
  0x79   :  { %1600 = vmatpush3.bf16.msk.msra.mxu0 %vm2143_vm1, %v1815_v10  ;;  %963 = vmatmul.mubr.f32.gmra.mrb[4].mxu1 %v834_v25 }
  0x7a   :  { %1631 = vmatpush3.bf16.msk.msra.mxu1 %vm2143_vm1, %v1815_v10  ;;  %1602 = vmatprep.subr.msk.bf16.mxu0 %vm2161_vm3, %v1815_v10 }
  0x7b   :  { %1624 = vmatprep.subr.msk.bf16.mxu1 %vm2161_vm3, %v1815_v10  ;;  %967 = vmatprep.mubr.f32.mxu1 %v838_v27 }
  0x7d   :  { %1604 = vmatpush3.bf16.msk.msra.mxu0 %vm2161_vm3, %v1815_v10  ;;  %968 = vmatmul.mubr.f32.gmra.mrb[6].mxu1 %v837_v30 }
  0x7e   :  { %1632 = vmatpush3.bf16.msk.msra.mxu1 %vm2161_vm3, %v1815_v10  ;;  %1606 = vmatprep.subr.msk.bf16.mxu0 %vm2179_vm6, %v1815_v10 }
  0x7f   :  { %1625 = vmatprep.subr.msk.bf16.mxu1 %vm2179_vm6, %v1815_v10  ;;  %1522 = vmatprep.mubr.f32.mxu1 %v836_v32 }
  0x81   :  { %1608 = vmatpush3.bf16.msk.msra.mxu0 %vm2179_vm6, %v1815_v10 }
  0x82   :  { %1633 = vmatpush3.bf16.msk.msra.mxu1 %vm2179_vm6, %v1815_v10  ;;  %1610 = vmatprep.subr.msk.bf16.mxu0 %vm1609_vm10, %v1815_v10 }
  0x83   :  { %1626 = vmatprep.subr.msk.bf16.mxu1 %vm1609_vm10, %v1815_v10 }
  0x85   :  { %1612 = vmatpush3.bf16.msk.msra.mxu0 %vm1609_vm10, %v1815_v10 }
  0x86   :  { %1634 = vmatpush3.bf16.msk.msra.mxu1 %vm1609_vm10, %v1815_v10  ;;  %1614 = vmatprep.subr.msk.bf16.mxu0 %vm1613_vm12, %v1815_v10 }
  0x87   :  { %1627 = vmatprep.subr.msk.bf16.mxu1 %vm1613_vm12, %v1815_v10 }
  0x89   :  { %1616 = vmatpush3.bf16.msk.msra.mxu0 %vm1613_vm12, %v1815_v10 }
  0x8a   :  { %1635 = vmatpush3.bf16.msk.msra.mxu1 %vm1613_vm12, %v1815_v10  ;;  %1618 = vmatprep.subr.msk.bf16.mxu0 %vm1617_vm0, %v1815_v10 }
  0x8b   :  { %1628 = vmatprep.subr.msk.bf16.mxu1 %vm1617_vm0, %v1815_v10 }
  0x8d   :  { %1620 = vmatpush3.bf16.msk.msra.mxu0 %vm1617_vm0, %v1815_v10 }
  0x8e   :  { %1636 = vmatpush3.bf16.msk.msra.mxu1 %vm1617_vm0, %v1815_v10 }
  0x90   :  { %1520 = vmatmul.mubr.f32.vlgmr.msra.gmra.mrb[4].mxu0 %v833_v1 }
  0x91   :  { %1523 = vmatmul.mubr.f32.vlgmr.msra.gmra.mrb[8].mxu1 %v839_v37 }
 0x143   :  { %v1483_v38 = vpop.f32.mrb[0].mxu0 }
 0x144   :  { %v774_v39 = vrot.slane %v1483_v38, 4  ;;  %v737_v40 = vpop.f32.mrb[1].mxu0  ;;  %v1417_v41 = vpop.f32.mrb[0].mxu1 }
 0x145   :  { %v1418_v42 = vpop.f32.mrb[1].mxu1  ;;  %v756_v43 = vrot.slane %v737_v40, 4 }
 0x146   :  { %v1419_v44 = vadd.f32 %v1418_v42, %v1417_v41  ;;  %v775_v46 = vmax.f32 %v1483_v38, %v774_v39 }
 0x147   :  { %v1486_v45 = vpop.f32.mrb[2].mxu0  ;;  %v757_v52 = vmax.f32 %v737_v40, %v756_v43 }
 0x148   :  { %v810_v47 = vrot.slane %v1486_v45, 4  ;;  %v747_v48 = vpop.f32.mrb[3].mxu0  ;;  %v1420_v49 = vpop.f32.mrb[2].mxu1  ;;  %v776_v55 = vrot.slane %v775_v46, 2 }
 0x149   :  { %v792_v50 = vrot.slane %v747_v48, 4  ;;  %v1421_v51 = vpop.f32.mrb[3].mxu1  ;;  %v758_v59 = vrot.slane %v757_v52, 2 }
 0x14a   :  { %v811_v53 = vmax.f32 %v1486_v45, %v810_v47  ;;  %v1422_v10 = vadd.f32 %v1421_v51, %v1420_v49  ;;  %v777_v62 = vmax.f32 %v775_v46, %v776_v55 }
 0x14b   :  { %v793_v54 = vmax.f32 %v747_v48, %v792_v50  ;;  %v759_v3 = vmax.f32 %v757_v52, %v758_v59 }
 0x14c   :  { %v1423_v56 = vpop.f32.mrb[4].mxu1  ;;  %v812_v57 = vrot.slane %v811_v53, 2  ;;  %v778_v6 = vrot.slane %v777_v62, 1 }
 0x14d   :  { %v1424_v58 = vpop.f32.mrb[5].mxu1  ;;  %v794_v61 = vrot.slane %v793_v54, 2  ;;  %v760_v8 = vrot.slane %v759_v3, 1 }
 0x14e   :  { %v1425_v60 = vadd.f32 %v1424_v58, %v1423_v56  ;;  %v813_v0 = vmax.f32 %v811_v53, %v812_v57  ;;  %v2219_v11 = vmax.f32 %v777_v62, %v778_v6 }
 0x14f   :  { %v795_v5 = vmax.f32 %v793_v54, %v794_v61  ;;  %v2223_v13 = vmax.f32 %v759_v3, %v760_v8 }
 0x150   :  { %v1426_v63 = vpop.f32.mrb[6].mxu1  ;;  %v814_v7 = vrot.slane %v813_v0, 1  ;;  %v780_v15 = vsub.f32 %v1483_v38, %v2219_v11 }
 0x151   :  { %v1427_v2 = vpop.f32.mrb[7].mxu1  ;;  %v796_v9 = vrot.slane %v795_v5, 1  ;;  %v762_v17 = vsub.f32 %v737_v40, %v2223_v13 }
 0x152   :  { %v1428_v4 = vadd.f32 %v1427_v2, %v1426_v63  ;;  %v2221_v12 = vmax.f32 %v813_v0, %v814_v7  ;;  %v781_v19 = vmul.f32 1.442695, %v780_v15 }
 0x153   :  { %v2225_v14 = vmax.f32 %v795_v5, %v796_v9  ;;  %v763_v21 = vmul.f32 1.442695, %v762_v17 }
 0x154   :  { %v816_v16 = vsub.f32 %v1486_v45, %v2221_v12  ;;  %1647 = vpow2.f32 %v781_v19 }
 0x155   :  { %v798_v18 = vsub.f32 %v747_v48, %v2225_v14 }
 0x156   :  { %v817_v20 = vmul.f32 1.442695, %v816_v16 }
 0x157   :  { %v799_v22 = vmul.f32 1.442695, %v798_v18 }
 0x158   :  { %1649 = vpow2.f32 %v817_v20 }
 0x159   :  { %1651 = vpow2.f32 %v763_v21 }
 0x15a   :  { %1653 = vpow2.f32 %v799_v22 }
 0x163   :  { %v1521_v23 = vpop.f32.mrb[4].mxu0 }
 0x164   :  { %v1045_v24 = vadd.f32 %v1521_v23, %v1422_v10  ;;  %v1524_v25 = vpop.f32.mrb[8].mxu1  ;;  %v1039_v26 = vpop.f32.mrb[5].mxu0 }
 0x165   :  { %v1055_v27 = vadd.f32 %v1524_v25, %v1428_v4  ;;  %v1040_v28 = vadd.f32 %v1419_v44, %v1039_v26  ;;  %v1049_v29 = vpop.f32.mrb[9].mxu1  ;;  %v1648_v44 = vpop.eup %1647 }
 0x166   :  { %v1076_v30 = vrot.slane %v1045_v24, 4  ;;  %v1050_v31 = vadd.f32 %v1425_v60, %v1049_v29  ;;  %v1650_v48 = vpop.eup %1649  ;;  %v783_v54 = vrot.slane %v1648_v44, 4 }
 0x167   :  { %v1112_v32 = vrot.slane %v1055_v27, 4  ;;  %v1058_v33 = vrot.slane %v1040_v28, 4  ;;  %v1652_v51 = vpop.eup %1651  ;;  %v819_v57 = vrot.slane %v1650_v48, 4 }
 0x168   :  { %v1077_v34 = vmax.f32 %v1045_v24, %v1076_v30  ;;  %v1094_v35 = vrot.slane %v1050_v31, 4  ;;  %v1654_v10 = vpop.eup %1653  ;;  %v765_v60 = vrot.slane %v1652_v51, 4  ;;  %v784_v3 = vadd.f32 %v1648_v44, %v783_v54 }
 0x169   :  { %v1113_v36 = vmax.f32 %v1055_v27, %v1112_v32  ;;  %v1059_v1 = vmax.f32 %v1040_v28, %v1058_v33  ;;  %v801_v63 = vrot.slane %v1654_v10, 4  ;;  %v820_v6 = vadd.f32 %v1650_v48, %v819_v57 }
 0x16a   :  { %v1078_v37 = vrot.slane %v1077_v34, 2  ;;  %v1095_v38 = vmax.f32 %v1050_v31, %v1094_v35  ;;  %v766_v8 = vadd.f32 %v1652_v51, %v765_v60  ;;  %v785_v15 = vrot.slane %v784_v3, 2 }
 0x16b   :  { %v1114_v39 = vrot.slane %v1113_v36, 2  ;;  %v1060_v40 = vrot.slane %v1059_v1, 2  ;;  %v802_v9 = vadd.f32 %v1654_v10, %v801_v63  ;;  %v821_v16 = vrot.slane %v820_v6, 2 }
 0x16c   :  { %v1079_v41 = vmax.f32 %v1077_v34, %v1078_v37  ;;  %v1096_v42 = vrot.slane %v1095_v38, 2  ;;  %v767_v17 = vrot.slane %v766_v8, 2  ;;  %v786_v19 = vadd.f32 %v785_v15, %v784_v3 }
 0x16d   :  { %v1115_v43 = vmax.f32 %v1113_v36, %v1114_v39  ;;  %v1061_v45 = vmax.f32 %v1059_v1, %v1060_v40  ;;  %v803_v18 = vrot.slane %v802_v9, 2  ;;  %v822_v20 = vadd.f32 %v821_v16, %v820_v6 }
 0x16e   :  { %v1080_v46 = vrot.slane %v1079_v41, 1  ;;  %v1097_v47 = vmax.f32 %v1095_v38, %v1096_v42  ;;  %v768_v21 = vadd.f32 %v767_v17, %v766_v8  ;;  %v787_v25 = vrot.slane %v786_v19, 1 }
 0x16f   :  { %v1116_v49 = vrot.slane %v1115_v43, 1  ;;  %v1062_v50 = vrot.slane %v1061_v45, 1  ;;  %v804_v23 = vadd.f32 %v803_v18, %v802_v9 }
 0x170   :  { %v2231_v52 = vmax.f32 %v1079_v41, %v1080_v46  ;;  %v1098_v53 = vrot.slane %v1097_v47, 1  ;;  %v788_v1 = vadd.f32 %v787_v25, %v786_v19 }
 0x171   :  { %v2233_v55 = vmax.f32 %v1115_v43, %v1116_v49  ;;  %v2235_v56 = vmax.f32 %v1061_v45, %v1062_v50  ;;  %v805_v34 = vrot.slane %v804_v23, 1 }
 0x172   :  { %v1082_v58 = vsub.f32 %v1045_v24, %v2231_v52  ;;  %v2238_v59 = vmax.f32 %v1097_v47, %v1098_v53 }
 0x173   :  { %v1118_v61 = vsub.f32 %v1055_v27, %v2233_v55  ;;  %v1064_v62 = vsub.f32 %v1040_v28, %v2235_v56  ;;  %v823_v28 = vrot.slane %v822_v20, 1  ;;  %v806_v44 = vadd.f32 %v805_v34, %v804_v23 }
 0x174   :  { %v1083_v0 = vmul.f32 1.442695, %v1082_v58  ;;  %v1100_v2 = vsub.f32 %v1050_v31, %v2238_v59  ;;  %v769_v31 = vrot.slane %v768_v21, 1 }
 0x175   :  { %v1119_v4 = vmul.f32 1.442695, %v1118_v61  ;;  %v1065_v5 = vmul.f32 1.442695, %v1064_v62  ;;  %v824_v39 = vadd.f32 %v823_v28, %v822_v20 }
 0x176   :  { %1655 = vpow2.f32 %v1083_v0  ;;  %v1101_v7 = vmul.f32 1.442695, %v1100_v2  ;;  %v770_v42 = vadd.f32 %v769_v31, %v768_v21 }
 0x177   :  { %1657 = vpow2.f32 %v1119_v4 }
 0x178   :  { %1659 = vpow2.f32 %v1065_v5 }
 0x179   :  { %1661 = vpow2.f32 %v1101_v7 }
 0x17a   :  { %1663 = vlog2.f32 %v788_v1 }
 0x17b   :  { %1665 = vlog2.f32 %v824_v39 }
 0x17c   :  { %1667 = vlog2.f32 %v770_v42 }
 0x17d   :  { %1669 = vlog2.f32 %v806_v44 }
 0x180   :  { %v1656_v22 = vpop.eup %1655 }
 0x181   :  { %v1658_v24 = vpop.eup %1657  ;;  %v1085_v26 = vrot.slane %v1656_v22, 4 }
 0x182   :  { %v1660_v27 = vpop.eup %1659  ;;  %v1121_v29 = vrot.slane %v1658_v24, 4 }
 0x183   :  { %v1662_v30 = vpop.eup %1661  ;;  %v1086_v32 = vadd.f32 %v1656_v22, %v1085_v26  ;;  %v1067_v33 = vrot.slane %v1660_v27, 4 }
 0x184   :  { %v1122_v35 = vadd.f32 %v1658_v24, %v1121_v29  ;;  %v1103_v36 = vrot.slane %v1662_v30, 4  ;;  %v1664_v61 = vpop.eup %1663 }
 0x185   :  { %v1087_v37 = vrot.slane %v1086_v32, 2  ;;  %v1068_v38 = vadd.f32 %v1660_v27, %v1067_v33  ;;  %v1666_v62 = vpop.eup %1665  ;;  %v790_v2 = vmul.f32 0.6931472, %v1664_v61 }
 0x186   :  { %v1123_v40 = vrot.slane %v1122_v35, 2  ;;  %v1104_v41 = vadd.f32 %v1662_v30, %v1103_v36  ;;  %v1668_v63 = vpop.eup %1667  ;;  %v826_v4 = vmul.f32 0.6931472, %v1666_v62 }
 0x187   :  { %v1088_v43 = vadd.f32 %v1087_v37, %v1086_v32  ;;  %v1069_v45 = vrot.slane %v1068_v38, 2  ;;  %v1670_v0 = vpop.eup %1669  ;;  %v772_v6 = vmul.f32 0.6931472, %v1668_v63  ;;  %v791_v17 = vadd.f32 %v790_v2, %v2219_v11 }
 0x188   :  { %v1124_v46 = vadd.f32 %v1123_v40, %v1122_v35  ;;  %v1105_v47 = vrot.slane %v1104_v41, 2  ;;  %v808_v9 = vmul.f32 0.6931472, %v1670_v0  ;;  %v827_v20 = vadd.f32 %v826_v4, %v2221_v12 }
 0x189   :  { %v1089_v48 = vrot.slane %v1088_v43, 1  ;;  %v1070_v49 = vadd.f32 %v1069_v45, %v1068_v38  ;;  %v773_v23 = vadd.f32 %v772_v6, %v2223_v13 }
 0x18a   :  { %v1125_v50 = vrot.slane %v1124_v46, 1  ;;  %v1106_v51 = vadd.f32 %v1105_v47, %v1104_v41  ;;  %v809_v26 = vadd.f32 %v808_v9, %v2225_v14 }
 0x18b   :  { %v1090_v53 = vadd.f32 %v1089_v48, %v1088_v43  ;;  %v1071_v10 = vrot.slane %v1070_v49, 1 }
 0x18c   :  { %v1126_v54 = vadd.f32 %v1125_v50, %v1124_v46  ;;  %v1107_v57 = vrot.slane %v1106_v51, 1 }
 0x18d   :  { %1671 = vlog2.f32 %v1090_v53  ;;  %v1072_v58 = vadd.f32 %v1071_v10, %v1070_v49 }
 0x18e   :  { %1673 = vlog2.f32 %v1126_v54  ;;  %v1108_v60 = vadd.f32 %v1107_v57, %v1106_v51 }
 0x18f   :  { %1675 = vlog2.f32 %v1072_v58 }
 0x190   :  { %1677 = vlog2.f32 %v1108_v60 }
 0x197   :  { %v1672_v3 = vpop.eup %1671 }
 0x198   :  { %v1674_v5 = vpop.eup %1673  ;;  %v1092_v7 = vmul.f32 0.6931472, %v1672_v3 }
 0x199   :  { %v1676_v8 = vpop.eup %1675  ;;  %v1128_v15 = vmul.f32 0.6931472, %v1674_v5 }
 0x19a   :  { %v1678_v16 = vpop.eup %1677  ;;  %v1093_v18 = vadd.f32 %v1092_v7, %v2231_v52  ;;  %v1074_v19 = vmul.f32 0.6931472, %v1676_v8 }
 0x19b   :  { %v1129_v21 = vadd.f32 %v1128_v15, %v2233_v55  ;;  %v1110_v22 = vmul.f32 0.6931472, %v1678_v16 }
 0x19c   :  { %v1131_v24 = vadd.f32 %v1093_v18, %v791_v17  ;;  %v1075_v25 = vadd.f32 %v1074_v19, %v2235_v56 }
 0x19d   :  { %v1133_v27 = vadd.f32 %v1129_v21, %v827_v20  ;;  %v1111_v28 = vadd.f32 %v1110_v22, %v2238_v59 }
 0x19e   :  { %v1130_v29 = vadd.f32 %v1075_v25, %v773_v23 }
 0x19f   :  { %v1132_v11 = vadd.f32 %v1111_v28, %v809_v26 }
 0x1a0   :  { %v1134_v30 = vmax.f32 %v1130_v29, %v1131_v24 }
 0x1a2   :  { %v1135_v52 = vmax.f32 %v1134_v30, %v1132_v11 }
 0x1a4   :  { %v1136_v31 = vmax.f32 %v1135_v52, %v1133_v27 }
 0x1a6   :  { %v1144_v32 = vsub.f32 %v1132_v11, %v1136_v31  ;;  %v1137_v12 = vsub.f32 %v1130_v29, %v1136_v31  ;;  %v1140_v33 = vsub.f32 %v1131_v24, %v1136_v31  ;;  %v1148_v55 = vsub.f32 %v1133_v27, %v1136_v31 }
 0x1a8   :  { %v1138_v34 = vmul.f32 1.442695, %v1137_v12  ;;  %v1141_v35 = vmul.f32 1.442695, %v1140_v33  ;;  %v1145_v13 = vmul.f32 1.442695, %v1144_v32 }
 0x1a9   :  { %v1149_v56 = vmul.f32 1.442695, %v1148_v55 }
 0x1aa   :  { %1679 = vpow2.f32 %v1138_v34 }
 0x1ab   :  { %1681 = vpow2.f32 %v1141_v35 }
 0x1ac   :  { %1683 = vpow2.f32 %v1145_v13 }
 0x1ad   :  { %1685 = vpow2.f32 %v1149_v56 }
 0x1b4   :  { %v1680_v14 = vpop.eup %1679 }
 0x1b5   :  { %v1682_v36 = vpop.eup %1681 }
 0x1b6   :  { %v1143_v59 = vadd.f32 %v1682_v36, %v1680_v14  ;;  %v1684_v1 = vpop.eup %1683 }
 0x1b7   :  { %v1686_v38 = vpop.eup %1685 }
 0x1b8   :  { %v1147_v37 = vadd.f32 %v1684_v1, %v1143_v59 }
 0x1ba   :  { %v1151_v39 = vadd.f32 %v1686_v38, %v1147_v37 }
 0x1bc   :  { %1687 = vlog2.f32 %v1151_v39 }
 0x1c6   :  { %v1688_v40 = vpop.eup %1687 }
 0x1c7   :  { %v1153_v41 = vmul.f32 0.6931472, %v1688_v40 }
 0x1c9   :  { %v1154_v42 = vadd.f32 %v1153_v41, %v1136_v31 }
 0x1cb   :  { %1155 = vst [vmem:[#allocation12] sm:$0x1] %v1154_v42 }
 0x1cc   :  { %1788 = shalt.err (!%p1785_p8)
}
 0x1cd   :  { %s1789_s16 = scalar_lea.hbm %s2267_s4, 16 }
 0x1ce   :  { %p1790_p9 = scmp.ne.s32.totalorder %s2267_s4, %s1789_s16  ;;  %p1793_p10 = scmp.lt.u32.totalorder %s1789_s16, %s2267_s4 }
 0x1d0   :  { %p1795_p11 = pnand %p1793_p10, %p1790_p9 }
 0x1d2   :  { %1798 = shalt.err (!%p1795_p11)
}
 0x1d3   :  { %1165 = dma.vmem_to_hbm [thread:$0]  %s1163_s12, 16, %s2267_s4, [#allocation6]  }
 0x1d4   :  { %1805 = dma.done.wait [#allocation6], 16  }
 0x1d5   :  { %1806 = vsyncadd [#allocation6], 4294967280 }
 0x1d6   :  { %1169 = vsyncpa [#allocation5], 1 }
 0x1d7   :  { %1170 = vsyncpa [#allocation8], 1 }
 0x1d8   :  { %1171 = vsyncpa [#allocation11], 1 }
 0x1d9   :  { %1172 = vsyncpa [#allocation6], 1 }

</bundles_post_ra>
